<compile_context>
chip_gen: v7x
topology: tpu7x:2x2x1
jax: 0.10.0
libtpu: 0.0.40
codegen_flags: <defaults>
</compile_context>

<pallas_src>
import numpy as np
import jax
import jax.numpy as jnp
from jax import lax
from jax.experimental import pallas as pl
from jax.experimental.pallas import tpu as pltpu

NUM_LAYERS = 2  # kernel below is specialized for the module's 2 layers


def _bf16_dot(a, b):
    """MXU matmul: bf16 inputs, f32 accumulation (single pass, no HIGHEST)."""
    return jnp.dot(a.astype(jnp.bfloat16), b.astype(jnp.bfloat16),
                   preferred_element_type=jnp.float32)


# ----------------------------------------------------------------------------
# Fused Pallas kernel: 2-layer BiLSTM + FC on last timestep
# ----------------------------------------------------------------------------
def bilstm_fused_kernel(xcat_ref,                         # (T*Bp, 2D): [x_t | x_{T-1-t}]
                        wih0_ref, whh0_ref, b0_ref,       # fused layer-0 (both dirs)
                        wih1f_ref, whh1f_ref, b1f_ref,    # layer-1 forward (i,f,o,g)
                        wih1b_ref, whh1b_ref, b1b_ref,    # layer-1 backward (i,f,o,g)
                        fcw_ref, fcb_ref,                 # final Linear
                        out_ref,                          # (Bp, O)
                        proj0_scr,                        # (T*Bp, 8H)
                        l0_scr,                           # (T*Bp, 2H): [fwd | bwd] per t
                        proj1_scr):                       # (T*Bp, 4H)
    Bp = out_ref.shape[0]                  # padded batch (multiple of 8)
    T = xcat_ref.shape[0] // Bp
    H = whh1f_ref.shape[0]
    H2, H3, H4, H6, H8 = 2 * H, 3 * H, 4 * H, 6 * H, 8 * H

    # ---- layer 0: single hoisted projection for BOTH directions --------------
    # fused gate column order: [i_f,i_b, f_f,f_b, o_f,o_b, g_f,g_b]
    proj0_scr[...] = _bf16_dot(xcat_ref[...], wih0_ref[...]) + b0_ref[...]

    whh0_bf = whh0_ref[...].astype(jnp.bfloat16)          # (2H, 8H) block-structured
    h2 = jnp.zeros((Bp, H2), jnp.bfloat16)                # [h_fwd | h_bwd]
    c2 = jnp.zeros((Bp, H2), jnp.float32)                 # [c_fwd | c_bwd]
    for s in range(T):                     # fully unrolled; T static & small
        flo = s * Bp                       # forward timestep s
        blo = (T - 1 - s) * Bp             # backward timestep T-1-s
        gates = proj0_scr[flo:flo + Bp, :] + jnp.dot(
            h2, whh0_bf, preferred_element_type=jnp.float32)        # (Bp, 8H)
        sg = jax.nn.sigmoid(gates[:, 0:H6])               # i2 | f2 | o2
        g2 = jnp.tanh(gates[:, H6:H8])
        c2 = sg[:, H2:H4] * c2 + sg[:, 0:H2] * g2
        h2f32 = sg[:, H4:H6] * jnp.tanh(c2)
        l0_scr[flo:flo + Bp, 0:H] = h2f32[:, 0:H]          # fwd output @ time s
        l0_scr[blo:blo + Bp, H:H2] = h2f32[:, H:H2]        # bwd output @ time T-1-s
        h2 = h2f32.astype(jnp.bfloat16)

    # ---- layer 1 forward: only the final hidden state is needed --------------
    proj1_scr[...] = _bf16_dot(l0_scr[...], wih1f_ref[...]) + b1f_ref[...]
    whh1f_bf = whh1f_ref[...].astype(jnp.bfloat16)
    h = jnp.zeros((Bp, H), jnp.bfloat16)
    c = jnp.zeros((Bp, H), jnp.float32)
    for t in range(T):
        lo = t * Bp
        gates = proj1_scr[lo:lo + Bp, :] + jnp.dot(
            h, whh1f_bf, preferred_element_type=jnp.float32)        # (Bp, 4H)
        sg = jax.nn.sigmoid(gates[:, 0:H3])               # i | f | o
        g = jnp.tanh(gates[:, H3:H4])
        c = sg[:, H:H2] * c + sg[:, 0:H] * g
        h = (sg[:, H2:H3] * jnp.tanh(c)).astype(jnp.bfloat16)
    h1f = h

    # ---- layer 1 backward: out[:, -1, :] only needs the first reverse step.
    #      Zero init => h@W_hh and f*c terms vanish (skipped entirely). --------
    lo = (T - 1) * Bp
    gb = _bf16_dot(l0_scr[lo:lo + Bp, :], wih1b_ref[...]) + b1b_ref[...]
    sgb = jax.nn.sigmoid(gb[:, 0:H3])
    cb = sgb[:, 0:H] * jnp.tanh(gb[:, H3:H4])
    h1b = (sgb[:, H2:H3] * jnp.tanh(cb)).astype(jnp.bfloat16)

    # ---- fused final Linear on the last timestep ------------------------------
    out_ref[...] = (_bf16_dot(h1f, fcw_ref[0:H, :])
                    + _bf16_dot(h1b, fcw_ref[H:H2, :])
                    + fcb_ref[...])


# ----------------------------------------------------------------------------
# Wrapper-side weight fusion / gate-column permutation
# ----------------------------------------------------------------------------
def _split_gates(w, H):
    # last dim (..., 4H), PyTorch gate order (i, f, g, o)
    return w[..., 0:H], w[..., H:2 * H], w[..., 2 * H:3 * H], w[..., 3 * H:4 * H]


def _place_dir(w, H, d):
    """Scatter one direction's (...,4H) i/f/g/o columns into the fused (...,8H)
    layout [i_f,i_b, f_f,f_b, o_f,o_b, g_f,g_b]; zeros in the other direction."""
    i, f, g, o = _split_gates(w, H)
    z = jnp.zeros_like(i)
    blocks = [z] * 8
    blocks[0 + d], blocks[2 + d], blocks[4 + d], blocks[6 + d] = i, f, o, g
    return jnp.concatenate(blocks, axis=-1)


def _reorder_ifog(w, H):
    """(i, f, g, o) -> (i, f, o, g) so the kernel does one sigmoid + one tanh."""
    i, f, g, o = _split_gates(w, H)
    return jnp.concatenate([i, f, o, g], axis=-1)


def bilstm_forward(x, params):
    """x: (B, T, input_dim) batch-first, same as the PyTorch module's forward."""
    B, T, D = x.shape
    p0, p1 = params["lstm"]
    H = p0["whh_f"].shape[0]
    O = params["fc_w"].shape[1]

    # Pad batch to a multiple of 8 (f32 sublane) so per-timestep slices of the
    # flattened buffers are aligned tiles.
    Bp = max(8, ((B + 7) // 8) * 8)
    x_tm = jnp.transpose(x, (1, 0, 2))                     # (T, B, D) time-major
    if Bp != B:
        x_tm = jnp.pad(x_tm, ((0, 0), (0, Bp - B), (0, 0)))
    # Forward input at step s is x[s]; backward input at step s is x[T-1-s]:
    x_cat = jnp.concatenate([x_tm, jnp.flip(x_tm, axis=0)], axis=-1)  # (T, Bp, 2D)
    x_cat2d = x_cat.reshape(T * Bp, 2 * D)

    # Fused layer-0 weights (one projection matmul, one per-step W_hh matmul).
    wih0 = jnp.concatenate([_place_dir(p0["wih_f"], H, 0),
                            _place_dir(p0["wih_b"], H, 1)], axis=0)   # (2D, 8H)
    whh0 = jnp.concatenate([_place_dir(p0["whh_f"], H, 0),
                            _place_dir(p0["whh_b"], H, 1)], axis=0)   # (2H, 8H)
    b0 = _place_dir(p0["b_f"], H, 0) + _place_dir(p0["b_b"], H, 1)    # (1, 8H)

    wih1f = _reorder_ifog(p1["wih_f"], H)
    whh1f = _reorder_ifog(p1["whh_f"], H)
    b1f = _reorder_ifog(p1["b_f"], H)
    wih1b = _reorder_ifog(p1["wih_b"], H)
    whh1b = _reorder_ifog(p1["whh_b"], H)
    b1b = _reorder_ifog(p1["b_b"], H)

    vmem = pl.BlockSpec(memory_space=pltpu.MemorySpace.VMEM)
    out = pl.pallas_call(
        bilstm_fused_kernel,
        out_shape=jax.ShapeDtypeStruct((Bp, O), jnp.float32),
        in_specs=[vmem] * 12,
        out_specs=vmem,
        scratch_shapes=[
            pltpu.VMEM((T * Bp, 8 * H), jnp.float32),      # fused layer-0 projection
            pltpu.VMEM((T * Bp, 2 * H), jnp.float32),      # layer-0 hidden seq [fwd|bwd]
            pltpu.VMEM((T * Bp, 4 * H), jnp.float32),      # layer-1 fwd projection
        ],
    )(
        x_cat2d, wih0, whh0, b0,
        wih1f, whh1f, b1f, wih1b, whh1b, b1b,
        params["fc_w"], params["fc_b"],
    )
    return out[:B]


# ----------------------------------------------------------------------------
# Deterministic parameter init (shapes consistent with nn.LSTM / nn.Linear)
# ----------------------------------------------------------------------------
def init_params(key, input_dim, hidden_dim, output_dim):
    bound = 1.0 / np.sqrt(hidden_dim)
    layers = []
    for l in range(NUM_LAYERS):
        din = input_dim if l == 0 else 2 * hidden_dim
        layer = {}
        for d in ("f", "b"):
            key, k1, k2, k3, k4 = jax.random.split(key, 5)
            layer[f"wih_{d}"] = jax.random.uniform(
                k1, (din, 4 * hidden_dim), jnp.float32, -bound, bound)
            layer[f"whh_{d}"] = jax.random.uniform(
                k2, (hidden_dim, 4 * hidden_dim), jnp.float32, -bound, bound)
            b_ih = jax.random.uniform(
                k3, (4 * hidden_dim,), jnp.float32, -bound, bound)
            b_hh = jax.random.uniform(
                k4, (4 * hidden_dim,), jnp.float32, -bound, bound)
            layer[f"b_{d}"] = (b_ih + b_hh).reshape(1, 4 * hidden_dim)
        layers.append(layer)
    fcb = 1.0 / np.sqrt(2 * hidden_dim)
    key, kw, kb = jax.random.split(key, 3)
    fc_w = jax.random.uniform(
        kw, (2 * hidden_dim, output_dim), jnp.float32, -fcb, fcb)
    fc_b = jax.random.uniform(kb, (1, output_dim), jnp.float32, -fcb, fcb)
    return {"lstm": layers, "fc_w": fc_w, "fc_b": fc_b}


# ----------------------------------------------------------------------------
# Pure-JAX reference (mirrors PyTorch LSTM semantics, same bf16 matmul path)
# ----------------------------------------------------------------------------
def _ref_lstm_dir(x_tm, wih, whh, bias):
    H = whh.shape[0]
    B = x_tm.shape[1]

    def step(carry, x_t):
        h, c = carry
        g = _bf16_dot(x_t, wih) + _bf16_dot(h, whh) + bias
        i = jax.nn.sigmoid(g[:, 0 * H:1 * H])
        f = jax.nn.sigmoid(g[:, 1 * H:2 * H])
        gg = jnp.tanh(g[:, 2 * H:3 * H])
        o = jax.nn.sigmoid(g[:, 3 * H:4 * H])
        c = f * c + i * gg
        h = o * jnp.tanh(c)
        return (h, c), h

    init = (jnp.zeros((B, H), jnp.float32), jnp.zeros((B, H), jnp.float32))
    _, hs = lax.scan(step, init, x_tm)
    return hs


def ref_forward(x, params):
    layer_in = jnp.transpose(x, (1, 0, 2))
    for l in range(NUM_LAYERS):
        p = params["lstm"][l]
        h_fwd = _ref_lstm_dir(layer_in, p["wih_f"], p["whh_f"], p["b_f"])
        h_bwd = jnp.flip(
            _ref_lstm_dir(jnp.flip(layer_in, 0), p["wih_b"], p["whh_b"], p["b_b"]), 0)
        layer_in = jnp.concatenate([h_fwd, h_bwd], axis=-1)
    last = layer_in[-1]
    return _bf16_dot(last, params["fc_w"]) + params["fc_b"]


# ----------------------------------------------------------------------------
if __name__ == "__main__":
    B, T = 4, 8
    INPUT_DIM, HIDDEN_DIM, OUTPUT_DIM = 16, 32, 8

    key = jax.random.PRNGKey(0)
    key, kx, kp = jax.random.split(key, 3)
    x = jax.random.normal(kx, (B, T, INPUT_DIM), jnp.float32)
    params = init_params(kp, INPUT_DIM, HIDDEN_DIM, OUTPUT_DIM)

    out = jax.block_until_ready(bilstm_forward(x, params))
    ref = jax.block_until_ready(ref_forward(x, params))

    np.testing.assert_allclose(np.asarray(out), np.asarray(ref),
                               rtol=2e-3, atol=2e-3)
    assert out.shape == (B, OUTPUT_DIM)
    print("KERNEL_OK")
</pallas_src>

<mosaic_0001>
module attributes {stable_mosaic.version = 11 : i64} {
  func.func @bilstm_fused_kernel(%arg0: memref<64x32xf32, #tpu.memory_space<vmem>>, %arg1: memref<32x256xf32, #tpu.memory_space<vmem>>, %arg2: memref<64x256xf32, #tpu.memory_space<vmem>>, %arg3: memref<1x256xf32, #tpu.memory_space<vmem>>, %arg4: memref<64x128xf32, #tpu.memory_space<vmem>>, %arg5: memref<32x128xf32, #tpu.memory_space<vmem>>, %arg6: memref<1x128xf32, #tpu.memory_space<vmem>>, %arg7: memref<64x128xf32, #tpu.memory_space<vmem>>, %arg8: memref<32x128xf32, #tpu.memory_space<vmem>>, %arg9: memref<1x128xf32, #tpu.memory_space<vmem>>, %arg10: memref<64x8xf32, #tpu.memory_space<vmem>>, %arg11: memref<1x8xf32, #tpu.memory_space<vmem>>, %arg12: memref<8x8xf32, #tpu.memory_space<vmem>>, %arg13: memref<64x256xf32, #tpu.memory_space<vmem>>, %arg14: memref<64x64xf32, #tpu.memory_space<vmem>>, %arg15: memref<64x128xf32, #tpu.memory_space<vmem>>) attributes {dimension_semantics = [], scalar_prefetch = 0 : i64, scratch_operands = 3 : i64, tpu.core_type = #tpu.core_type<tc>} {
    %c0 = arith.constant 0 : index
    %c0_0 = arith.constant 0 : index
    %0 = vector.load %arg0[%c0, %c0_0] : memref<64x32xf32, #tpu.memory_space<vmem>>, vector<64x32xf32>
    %c0_1 = arith.constant 0 : index
    %c0_2 = arith.constant 0 : index
    %1 = vector.load %arg1[%c0_1, %c0_2] : memref<32x256xf32, #tpu.memory_space<vmem>>, vector<32x256xf32>
    %2 = arith.truncf %0 : vector<64x32xf32> to vector<64x32xbf16>
    %3 = arith.truncf %1 : vector<32x256xf32> to vector<32x256xbf16>
    %cst = arith.constant dense<0.000000e+00> : vector<64x256xf32>
    %4 = tpu.matmul %2, %3, %cst {dimension_numbers = #tpu.dot_dimension_numbers<[1], [0], [0], [1], [0, 0, 1, 1], [], []>} : vector<64x32xbf16>, vector<32x256xbf16>, vector<64x256xf32> -> vector<64x256xf32>
    %c0_3 = arith.constant 0 : index
    %c0_4 = arith.constant 0 : index
    %5 = vector.load %arg3[%c0_3, %c0_4] : memref<1x256xf32, #tpu.memory_space<vmem>>, vector<1x256xf32>
    %6 = vector.broadcast %5 : vector<1x256xf32> to vector<64x256xf32>
    %7 = arith.addf %4, %6 : vector<64x256xf32>
    %c0_5 = arith.constant 0 : index
    %c0_6 = arith.constant 0 : index
    %8 = vector.load %arg13[%c0_5, %c0_6] : memref<64x256xf32, #tpu.memory_space<vmem>>, vector<64x256xf32>
    tpu.vector_store %arg13[%c0_5, %c0_6], %7 {strides = array<i32>} : memref<64x256xf32, #tpu.memory_space<vmem>>, vector<64x256xf32>,
    %c0_7 = arith.constant 0 : index
    %c0_8 = arith.constant 0 : index
    %9 = vector.load %arg2[%c0_7, %c0_8] : memref<64x256xf32, #tpu.memory_space<vmem>>, vector<64x256xf32>
    %10 = arith.truncf %9 : vector<64x256xf32> to vector<64x256xbf16>
    %cst_9 = arith.constant 0.000000e+00 : bf16
    %11 = vector.broadcast %cst_9 : bf16 to vector<8x64xbf16>
    %cst_10 = arith.constant 0.000000e+00 : f32
    %12 = vector.broadcast %cst_10 : f32 to vector<8x64xf32>
    %c0_11 = arith.constant 0 : index
    %c0_12 = arith.constant 0 : index
    %13 = vector.load %arg13[%c0_11, %c0_12] : memref<64x256xf32, #tpu.memory_space<vmem>>, vector<8x256xf32>
    %cst_13 = arith.constant dense<0.000000e+00> : vector<8x256xf32>
    %14 = tpu.matmul %11, %10, %cst_13 {dimension_numbers = #tpu.dot_dimension_numbers<[1], [0], [0], [1], [0, 0, 1, 1], [], []>} : vector<8x64xbf16>, vector<64x256xbf16>, vector<8x256xf32> -> vector<8x256xf32>
    %15 = arith.addf %13, %14 : vector<8x256xf32>
    %16 = vector.extract_strided_slice %15 {offsets = [0, 0], sizes = [8, 192], strides = [1, 1]} : vector<8x256xf32> to vector<8x192xf32>
    %17 = arith.negf %16 : vector<8x192xf32>
    %18 = math.exp %17 : vector<8x192xf32>
    %cst_14 = arith.constant 1.000000e+00 : f32
    %19 = vector.broadcast %cst_14 : f32 to vector<8x192xf32>
    %20 = arith.addf %19, %18 : vector<8x192xf32>
    %21 = arith.divf %19, %20 : vector<8x192xf32>
    %22 = vector.extract_strided_slice %15 {offsets = [0, 192], sizes = [8, 64], strides = [1, 1]} : vector<8x256xf32> to vector<8x64xf32>
    %23 = math.tanh %22 : vector<8x64xf32>
    %24 = vector.extract_strided_slice %21 {offsets = [0, 64], sizes = [8, 64], strides = [1, 1]} : vector<8x192xf32> to vector<8x64xf32>
    %25 = arith.mulf %24, %12 : vector<8x64xf32>
    %26 = vector.extract_strided_slice %21 {offsets = [0, 0], sizes = [8, 64], strides = [1, 1]} : vector<8x192xf32> to vector<8x64xf32>
    %27 = arith.mulf %26, %23 : vector<8x64xf32>
    %28 = arith.addf %25, %27 : vector<8x64xf32>
    %29 = vector.extract_strided_slice %21 {offsets = [0, 128], sizes = [8, 64], strides = [1, 1]} : vector<8x192xf32> to vector<8x64xf32>
    %30 = math.tanh %28 : vector<8x64xf32>
    %31 = arith.mulf %29, %30 : vector<8x64xf32>
    %32 = vector.extract_strided_slice %31 {offsets = [0, 0], sizes = [8, 32], strides = [1, 1]} : vector<8x64xf32> to vector<8x32xf32>
    %c0_15 = arith.constant 0 : index
    %c0_16 = arith.constant 0 : index
    %33 = vector.load %arg14[%c0_15, %c0_16] : memref<64x64xf32, #tpu.memory_space<vmem>>, vector<8x32xf32>
    tpu.vector_store %arg14[%c0_15, %c0_16], %32 {strides = array<i32>} : memref<64x64xf32, #tpu.memory_space<vmem>>, vector<8x32xf32>,
    %34 = vector.extract_strided_slice %31 {offsets = [0, 32], sizes = [8, 32], strides = [1, 1]} : vector<8x64xf32> to vector<8x32xf32>
    %c56 = arith.constant 56 : index
    %c32 = arith.constant 32 : index
    %35 = vector.load %arg14[%c56, %c32] : memref<64x64xf32, #tpu.memory_space<vmem>>, vector<8x32xf32>
    tpu.vector_store %arg14[%c56, %c32], %34 {strides = array<i32>} : memref<64x64xf32, #tpu.memory_space<vmem>>, vector<8x32xf32>,
    %36 = arith.truncf %31 : vector<8x64xf32> to vector<8x64xbf16>
    %c8 = arith.constant 8 : index
    %c0_17 = arith.constant 0 : index
    %37 = vector.load %arg13[%c8, %c0_17] : memref<64x256xf32, #tpu.memory_space<vmem>>, vector<8x256xf32>
    %cst_18 = arith.constant dense<0.000000e+00> : vector<8x256xf32>
    %38 = tpu.matmul %36, %10, %cst_18 {dimension_numbers = #tpu.dot_dimension_numbers<[1], [0], [0], [1], [0, 0, 1, 1], [], []>} : vector<8x64xbf16>, vector<64x256xbf16>, vector<8x256xf32> -> vector<8x256xf32>
    %39 = arith.addf %37, %38 : vector<8x256xf32>
    %40 = vector.extract_strided_slice %39 {offsets = [0, 0], sizes = [8, 192], strides = [1, 1]} : vector<8x256xf32> to vector<8x192xf32>
    %41 = arith.negf %40 : vector<8x192xf32>
    %42 = math.exp %41 : vector<8x192xf32>
    %cst_19 = arith.constant 1.000000e+00 : f32
    %43 = vector.broadcast %cst_19 : f32 to vector<8x192xf32>
    %44 = arith.addf %43, %42 : vector<8x192xf32>
    %45 = arith.divf %43, %44 : vector<8x192xf32>
    %46 = vector.extract_strided_slice %39 {offsets = [0, 192], sizes = [8, 64], strides = [1, 1]} : vector<8x256xf32> to vector<8x64xf32>
    %47 = math.tanh %46 : vector<8x64xf32>
    %48 = vector.extract_strided_slice %45 {offsets = [0, 64], sizes = [8, 64], strides = [1, 1]} : vector<8x192xf32> to vector<8x64xf32>
    %49 = arith.mulf %48, %28 : vector<8x64xf32>
    %50 = vector.extract_strided_slice %45 {offsets = [0, 0], sizes = [8, 64], strides = [1, 1]} : vector<8x192xf32> to vector<8x64xf32>
    %51 = arith.mulf %50, %47 : vector<8x64xf32>
    %52 = arith.addf %49, %51 : vector<8x64xf32>
    %53 = vector.extract_strided_slice %45 {offsets = [0, 128], sizes = [8, 64], strides = [1, 1]} : vector<8x192xf32> to vector<8x64xf32>
    %54 = math.tanh %52 : vector<8x64xf32>
    %55 = arith.mulf %53, %54 : vector<8x64xf32>
    %56 = vector.extract_strided_slice %55 {offsets = [0, 0], sizes = [8, 32], strides = [1, 1]} : vector<8x64xf32> to vector<8x32xf32>
    %c8_20 = arith.constant 8 : index
    %c0_21 = arith.constant 0 : index
    %57 = vector.load %arg14[%c8_20, %c0_21] : memref<64x64xf32, #tpu.memory_space<vmem>>, vector<8x32xf32>
    tpu.vector_store %arg14[%c8_20, %c0_21], %56 {strides = array<i32>} : memref<64x64xf32, #tpu.memory_space<vmem>>, vector<8x32xf32>,
    %58 = vector.extract_strided_slice %55 {offsets = [0, 32], sizes = [8, 32], strides = [1, 1]} : vector<8x64xf32> to vector<8x32xf32>
    %c48 = arith.constant 48 : index
    %c32_22 = arith.constant 32 : index
    %59 = vector.load %arg14[%c48, %c32_22] : memref<64x64xf32, #tpu.memory_space<vmem>>, vector<8x32xf32>
    tpu.vector_store %arg14[%c48, %c32_22], %58 {strides = array<i32>} : memref<64x64xf32, #tpu.memory_space<vmem>>, vector<8x32xf32>,
    %60 = arith.truncf %55 : vector<8x64xf32> to vector<8x64xbf16>
    %c16 = arith.constant 16 : index
    %c0_23 = arith.constant 0 : index
    %61 = vector.load %arg13[%c16, %c0_23] : memref<64x256xf32, #tpu.memory_space<vmem>>, vector<8x256xf32>
    %cst_24 = arith.constant dense<0.000000e+00> : vector<8x256xf32>
    %62 = tpu.matmul %60, %10, %cst_24 {dimension_numbers = #tpu.dot_dimension_numbers<[1], [0], [0], [1], [0, 0, 1, 1], [], []>} : vector<8x64xbf16>, vector<64x256xbf16>, vector<8x256xf32> -> vector<8x256xf32>
    %63 = arith.addf %61, %62 : vector<8x256xf32>
    %64 = vector.extract_strided_slice %63 {offsets = [0, 0], sizes = [8, 192], strides = [1, 1]} : vector<8x256xf32> to vector<8x192xf32>
    %65 = arith.negf %64 : vector<8x192xf32>
    %66 = math.exp %65 : vector<8x192xf32>
    %cst_25 = arith.constant 1.000000e+00 : f32
    %67 = vector.broadcast %cst_25 : f32 to vector<8x192xf32>
    %68 = arith.addf %67, %66 : vector<8x192xf32>
    %69 = arith.divf %67, %68 : vector<8x192xf32>
    %70 = vector.extract_strided_slice %63 {offsets = [0, 192], sizes = [8, 64], strides = [1, 1]} : vector<8x256xf32> to vector<8x64xf32>
    %71 = math.tanh %70 : vector<8x64xf32>
    %72 = vector.extract_strided_slice %69 {offsets = [0, 64], sizes = [8, 64], strides = [1, 1]} : vector<8x192xf32> to vector<8x64xf32>
    %73 = arith.mulf %72, %52 : vector<8x64xf32>
    %74 = vector.extract_strided_slice %69 {offsets = [0, 0], sizes = [8, 64], strides = [1, 1]} : vector<8x192xf32> to vector<8x64xf32>
    %75 = arith.mulf %74, %71 : vector<8x64xf32>
    %76 = arith.addf %73, %75 : vector<8x64xf32>
    %77 = vector.extract_strided_slice %69 {offsets = [0, 128], sizes = [8, 64], strides = [1, 1]} : vector<8x192xf32> to vector<8x64xf32>
    %78 = math.tanh %76 : vector<8x64xf32>
    %79 = arith.mulf %77, %78 : vector<8x64xf32>
    %80 = vector.extract_strided_slice %79 {offsets = [0, 0], sizes = [8, 32], strides = [1, 1]} : vector<8x64xf32> to vector<8x32xf32>
    %c16_26 = arith.constant 16 : index
    %c0_27 = arith.constant 0 : index
    %81 = vector.load %arg14[%c16_26, %c0_27] : memref<64x64xf32, #tpu.memory_space<vmem>>, vector<8x32xf32>
    tpu.vector_store %arg14[%c16_26, %c0_27], %80 {strides = array<i32>} : memref<64x64xf32, #tpu.memory_space<vmem>>, vector<8x32xf32>,
    %82 = vector.extract_strided_slice %79 {offsets = [0, 32], sizes = [8, 32], strides = [1, 1]} : vector<8x64xf32> to vector<8x32xf32>
    %c40 = arith.constant 40 : index
    %c32_28 = arith.constant 32 : index
    %83 = vector.load %arg14[%c40, %c32_28] : memref<64x64xf32, #tpu.memory_space<vmem>>, vector<8x32xf32>
    tpu.vector_store %arg14[%c40, %c32_28], %82 {strides = array<i32>} : memref<64x64xf32, #tpu.memory_space<vmem>>, vector<8x32xf32>,
    %84 = arith.truncf %79 : vector<8x64xf32> to vector<8x64xbf16>
    %c24 = arith.constant 24 : index
    %c0_29 = arith.constant 0 : index
    %85 = vector.load %arg13[%c24, %c0_29] : memref<64x256xf32, #tpu.memory_space<vmem>>, vector<8x256xf32>
    %cst_30 = arith.constant dense<0.000000e+00> : vector<8x256xf32>
    %86 = tpu.matmul %84, %10, %cst_30 {dimension_numbers = #tpu.dot_dimension_numbers<[1], [0], [0], [1], [0, 0, 1, 1], [], []>} : vector<8x64xbf16>, vector<64x256xbf16>, vector<8x256xf32> -> vector<8x256xf32>
    %87 = arith.addf %85, %86 : vector<8x256xf32>
    %88 = vector.extract_strided_slice %87 {offsets = [0, 0], sizes = [8, 192], strides = [1, 1]} : vector<8x256xf32> to vector<8x192xf32>
    %89 = arith.negf %88 : vector<8x192xf32>
    %90 = math.exp %89 : vector<8x192xf32>
    %cst_31 = arith.constant 1.000000e+00 : f32
    %91 = vector.broadcast %cst_31 : f32 to vector<8x192xf32>
    %92 = arith.addf %91, %90 : vector<8x192xf32>
    %93 = arith.divf %91, %92 : vector<8x192xf32>
    %94 = vector.extract_strided_slice %87 {offsets = [0, 192], sizes = [8, 64], strides = [1, 1]} : vector<8x256xf32> to vector<8x64xf32>
    %95 = math.tanh %94 : vector<8x64xf32>
    %96 = vector.extract_strided_slice %93 {offsets = [0, 64], sizes = [8, 64], strides = [1, 1]} : vector<8x192xf32> to vector<8x64xf32>
    %97 = arith.mulf %96, %76 : vector<8x64xf32>
    %98 = vector.extract_strided_slice %93 {offsets = [0, 0], sizes = [8, 64], strides = [1, 1]} : vector<8x192xf32> to vector<8x64xf32>
    %99 = arith.mulf %98, %95 : vector<8x64xf32>
    %100 = arith.addf %97, %99 : vector<8x64xf32>
    %101 = vector.extract_strided_slice %93 {offsets = [0, 128], sizes = [8, 64], strides = [1, 1]} : vector<8x192xf32> to vector<8x64xf32>
    %102 = math.tanh %100 : vector<8x64xf32>
    %103 = arith.mulf %101, %102 : vector<8x64xf32>
    %104 = vector.extract_strided_slice %103 {offsets = [0, 0], sizes = [8, 32], strides = [1, 1]} : vector<8x64xf32> to vector<8x32xf32>
    %c24_32 = arith.constant 24 : index
    %c0_33 = arith.constant 0 : index
    %105 = vector.load %arg14[%c24_32, %c0_33] : memref<64x64xf32, #tpu.memory_space<vmem>>, vector<8x32xf32>
    tpu.vector_store %arg14[%c24_32, %c0_33], %104 {strides = array<i32>} : memref<64x64xf32, #tpu.memory_space<vmem>>, vector<8x32xf32>,
    %106 = vector.extract_strided_slice %103 {offsets = [0, 32], sizes = [8, 32], strides = [1, 1]} : vector<8x64xf32> to vector<8x32xf32>
    %c32_34 = arith.constant 32 : index
    %c32_35 = arith.constant 32 : index
    %107 = vector.load %arg14[%c32_34, %c32_35] : memref<64x64xf32, #tpu.memory_space<vmem>>, vector<8x32xf32>
    tpu.vector_store %arg14[%c32_34, %c32_35], %106 {strides = array<i32>} : memref<64x64xf32, #tpu.memory_space<vmem>>, vector<8x32xf32>,
    %108 = arith.truncf %103 : vector<8x64xf32> to vector<8x64xbf16>
    %c32_36 = arith.constant 32 : index
    %c0_37 = arith.constant 0 : index
    %109 = vector.load %arg13[%c32_36, %c0_37] : memref<64x256xf32, #tpu.memory_space<vmem>>, vector<8x256xf32>
    %cst_38 = arith.constant dense<0.000000e+00> : vector<8x256xf32>
    %110 = tpu.matmul %108, %10, %cst_38 {dimension_numbers = #tpu.dot_dimension_numbers<[1], [0], [0], [1], [0, 0, 1, 1], [], []>} : vector<8x64xbf16>, vector<64x256xbf16>, vector<8x256xf32> -> vector<8x256xf32>
    %111 = arith.addf %109, %110 : vector<8x256xf32>
    %112 = vector.extract_strided_slice %111 {offsets = [0, 0], sizes = [8, 192], strides = [1, 1]} : vector<8x256xf32> to vector<8x192xf32>
    %113 = arith.negf %112 : vector<8x192xf32>
    %114 = math.exp %113 : vector<8x192xf32>
    %cst_39 = arith.constant 1.000000e+00 : f32
    %115 = vector.broadcast %cst_39 : f32 to vector<8x192xf32>
    %116 = arith.addf %115, %114 : vector<8x192xf32>
    %117 = arith.divf %115, %116 : vector<8x192xf32>
    %118 = vector.extract_strided_slice %111 {offsets = [0, 192], sizes = [8, 64], strides = [1, 1]} : vector<8x256xf32> to vector<8x64xf32>
    %119 = math.tanh %118 : vector<8x64xf32>
    %120 = vector.extract_strided_slice %117 {offsets = [0, 64], sizes = [8, 64], strides = [1, 1]} : vector<8x192xf32> to vector<8x64xf32>
    %121 = arith.mulf %120, %100 : vector<8x64xf32>
    %122 = vector.extract_strided_slice %117 {offsets = [0, 0], sizes = [8, 64], strides = [1, 1]} : vector<8x192xf32> to vector<8x64xf32>
    %123 = arith.mulf %122, %119 : vector<8x64xf32>
    %124 = arith.addf %121, %123 : vector<8x64xf32>
    %125 = vector.extract_strided_slice %117 {offsets = [0, 128], sizes = [8, 64], strides = [1, 1]} : vector<8x192xf32> to vector<8x64xf32>
    %126 = math.tanh %124 : vector<8x64xf32>
    %127 = arith.mulf %125, %126 : vector<8x64xf32>
    %128 = vector.extract_strided_slice %127 {offsets = [0, 0], sizes = [8, 32], strides = [1, 1]} : vector<8x64xf32> to vector<8x32xf32>
    %c32_40 = arith.constant 32 : index
    %c0_41 = arith.constant 0 : index
    %129 = vector.load %arg14[%c32_40, %c0_41] : memref<64x64xf32, #tpu.memory_space<vmem>>, vector<8x32xf32>
    tpu.vector_store %arg14[%c32_40, %c0_41], %128 {strides = array<i32>} : memref<64x64xf32, #tpu.memory_space<vmem>>, vector<8x32xf32>,
    %130 = vector.extract_strided_slice %127 {offsets = [0, 32], sizes = [8, 32], strides = [1, 1]} : vector<8x64xf32> to vector<8x32xf32>
    %c24_42 = arith.constant 24 : index
    %c32_43 = arith.constant 32 : index
    %131 = vector.load %arg14[%c24_42, %c32_43] : memref<64x64xf32, #tpu.memory_space<vmem>>, vector<8x32xf32>
    tpu.vector_store %arg14[%c24_42, %c32_43], %130 {strides = array<i32>} : memref<64x64xf32, #tpu.memory_space<vmem>>, vector<8x32xf32>,
    %132 = arith.truncf %127 : vector<8x64xf32> to vector<8x64xbf16>
    %c40_44 = arith.constant 40 : index
    %c0_45 = arith.constant 0 : index
    %133 = vector.load %arg13[%c40_44, %c0_45] : memref<64x256xf32, #tpu.memory_space<vmem>>, vector<8x256xf32>
    %cst_46 = arith.constant dense<0.000000e+00> : vector<8x256xf32>
    %134 = tpu.matmul %132, %10, %cst_46 {dimension_numbers = #tpu.dot_dimension_numbers<[1], [0], [0], [1], [0, 0, 1, 1], [], []>} : vector<8x64xbf16>, vector<64x256xbf16>, vector<8x256xf32> -> vector<8x256xf32>
    %135 = arith.addf %133, %134 : vector<8x256xf32>
    %136 = vector.extract_strided_slice %135 {offsets = [0, 0], sizes = [8, 192], strides = [1, 1]} : vector<8x256xf32> to vector<8x192xf32>
    %137 = arith.negf %136 : vector<8x192xf32>
    %138 = math.exp %137 : vector<8x192xf32>
    %cst_47 = arith.constant 1.000000e+00 : f32
    %139 = vector.broadcast %cst_47 : f32 to vector<8x192xf32>
    %140 = arith.addf %139, %138 : vector<8x192xf32>
    %141 = arith.divf %139, %140 : vector<8x192xf32>
    %142 = vector.extract_strided_slice %135 {offsets = [0, 192], sizes = [8, 64], strides = [1, 1]} : vector<8x256xf32> to vector<8x64xf32>
    %143 = math.tanh %142 : vector<8x64xf32>
    %144 = vector.extract_strided_slice %141 {offsets = [0, 64], sizes = [8, 64], strides = [1, 1]} : vector<8x192xf32> to vector<8x64xf32>
    %145 = arith.mulf %144, %124 : vector<8x64xf32>
    %146 = vector.extract_strided_slice %141 {offsets = [0, 0], sizes = [8, 64], strides = [1, 1]} : vector<8x192xf32> to vector<8x64xf32>
    %147 = arith.mulf %146, %143 : vector<8x64xf32>
    %148 = arith.addf %145, %147 : vector<8x64xf32>
    %149 = vector.extract_strided_slice %141 {offsets = [0, 128], sizes = [8, 64], strides = [1, 1]} : vector<8x192xf32> to vector<8x64xf32>
    %150 = math.tanh %148 : vector<8x64xf32>
    %151 = arith.mulf %149, %150 : vector<8x64xf32>
    %152 = vector.extract_strided_slice %151 {offsets = [0, 0], sizes = [8, 32], strides = [1, 1]} : vector<8x64xf32> to vector<8x32xf32>
    %c40_48 = arith.constant 40 : index
    %c0_49 = arith.constant 0 : index
    %153 = vector.load %arg14[%c40_48, %c0_49] : memref<64x64xf32, #tpu.memory_space<vmem>>, vector<8x32xf32>
    tpu.vector_store %arg14[%c40_48, %c0_49], %152 {strides = array<i32>} : memref<64x64xf32, #tpu.memory_space<vmem>>, vector<8x32xf32>,
    %154 = vector.extract_strided_slice %151 {offsets = [0, 32], sizes = [8, 32], strides = [1, 1]} : vector<8x64xf32> to vector<8x32xf32>
    %c16_50 = arith.constant 16 : index
    %c32_51 = arith.constant 32 : index
    %155 = vector.load %arg14[%c16_50, %c32_51] : memref<64x64xf32, #tpu.memory_space<vmem>>, vector<8x32xf32>
    tpu.vector_store %arg14[%c16_50, %c32_51], %154 {strides = array<i32>} : memref<64x64xf32, #tpu.memory_space<vmem>>, vector<8x32xf32>,
    %156 = arith.truncf %151 : vector<8x64xf32> to vector<8x64xbf16>
    %c48_52 = arith.constant 48 : index
    %c0_53 = arith.constant 0 : index
    %157 = vector.load %arg13[%c48_52, %c0_53] : memref<64x256xf32, #tpu.memory_space<vmem>>, vector<8x256xf32>
    %cst_54 = arith.constant dense<0.000000e+00> : vector<8x256xf32>
    %158 = tpu.matmul %156, %10, %cst_54 {dimension_numbers = #tpu.dot_dimension_numbers<[1], [0], [0], [1], [0, 0, 1, 1], [], []>} : vector<8x64xbf16>, vector<64x256xbf16>, vector<8x256xf32> -> vector<8x256xf32>
    %159 = arith.addf %157, %158 : vector<8x256xf32>
    %160 = vector.extract_strided_slice %159 {offsets = [0, 0], sizes = [8, 192], strides = [1, 1]} : vector<8x256xf32> to vector<8x192xf32>
    %161 = arith.negf %160 : vector<8x192xf32>
    %162 = math.exp %161 : vector<8x192xf32>
    %cst_55 = arith.constant 1.000000e+00 : f32
    %163 = vector.broadcast %cst_55 : f32 to vector<8x192xf32>
    %164 = arith.addf %163, %162 : vector<8x192xf32>
    %165 = arith.divf %163, %164 : vector<8x192xf32>
    %166 = vector.extract_strided_slice %159 {offsets = [0, 192], sizes = [8, 64], strides = [1, 1]} : vector<8x256xf32> to vector<8x64xf32>
    %167 = math.tanh %166 : vector<8x64xf32>
    %168 = vector.extract_strided_slice %165 {offsets = [0, 64], sizes = [8, 64], strides = [1, 1]} : vector<8x192xf32> to vector<8x64xf32>
    %169 = arith.mulf %168, %148 : vector<8x64xf32>
    %170 = vector.extract_strided_slice %165 {offsets = [0, 0], sizes = [8, 64], strides = [1, 1]} : vector<8x192xf32> to vector<8x64xf32>
    %171 = arith.mulf %170, %167 : vector<8x64xf32>
    %172 = arith.addf %169, %171 : vector<8x64xf32>
    %173 = vector.extract_strided_slice %165 {offsets = [0, 128], sizes = [8, 64], strides = [1, 1]} : vector<8x192xf32> to vector<8x64xf32>
    %174 = math.tanh %172 : vector<8x64xf32>
    %175 = arith.mulf %173, %174 : vector<8x64xf32>
    %176 = vector.extract_strided_slice %175 {offsets = [0, 0], sizes = [8, 32], strides = [1, 1]} : vector<8x64xf32> to vector<8x32xf32>
    %c48_56 = arith.constant 48 : index
    %c0_57 = arith.constant 0 : index
    %177 = vector.load %arg14[%c48_56, %c0_57] : memref<64x64xf32, #tpu.memory_space<vmem>>, vector<8x32xf32>
    tpu.vector_store %arg14[%c48_56, %c0_57], %176 {strides = array<i32>} : memref<64x64xf32, #tpu.memory_space<vmem>>, vector<8x32xf32>,
    %178 = vector.extract_strided_slice %175 {offsets = [0, 32], sizes = [8, 32], strides = [1, 1]} : vector<8x64xf32> to vector<8x32xf32>
    %c8_58 = arith.constant 8 : index
    %c32_59 = arith.constant 32 : index
    %179 = vector.load %arg14[%c8_58, %c32_59] : memref<64x64xf32, #tpu.memory_space<vmem>>, vector<8x32xf32>
    tpu.vector_store %arg14[%c8_58, %c32_59], %178 {strides = array<i32>} : memref<64x64xf32, #tpu.memory_space<vmem>>, vector<8x32xf32>,
    %180 = arith.truncf %175 : vector<8x64xf32> to vector<8x64xbf16>
    %c56_60 = arith.constant 56 : index
    %c0_61 = arith.constant 0 : index
    %181 = vector.load %arg13[%c56_60, %c0_61] : memref<64x256xf32, #tpu.memory_space<vmem>>, vector<8x256xf32>
    %cst_62 = arith.constant dense<0.000000e+00> : vector<8x256xf32>
    %182 = tpu.matmul %180, %10, %cst_62 {dimension_numbers = #tpu.dot_dimension_numbers<[1], [0], [0], [1], [0, 0, 1, 1], [], []>} : vector<8x64xbf16>, vector<64x256xbf16>, vector<8x256xf32> -> vector<8x256xf32>
    %183 = arith.addf %181, %182 : vector<8x256xf32>
    %184 = vector.extract_strided_slice %183 {offsets = [0, 0], sizes = [8, 192], strides = [1, 1]} : vector<8x256xf32> to vector<8x192xf32>
    %185 = arith.negf %184 : vector<8x192xf32>
    %186 = math.exp %185 : vector<8x192xf32>
    %cst_63 = arith.constant 1.000000e+00 : f32
    %187 = vector.broadcast %cst_63 : f32 to vector<8x192xf32>
    %188 = arith.addf %187, %186 : vector<8x192xf32>
    %189 = arith.divf %187, %188 : vector<8x192xf32>
    %190 = vector.extract_strided_slice %183 {offsets = [0, 192], sizes = [8, 64], strides = [1, 1]} : vector<8x256xf32> to vector<8x64xf32>
    %191 = math.tanh %190 : vector<8x64xf32>
    %192 = vector.extract_strided_slice %189 {offsets = [0, 64], sizes = [8, 64], strides = [1, 1]} : vector<8x192xf32> to vector<8x64xf32>
    %193 = arith.mulf %192, %172 : vector<8x64xf32>
    %194 = vector.extract_strided_slice %189 {offsets = [0, 0], sizes = [8, 64], strides = [1, 1]} : vector<8x192xf32> to vector<8x64xf32>
    %195 = arith.mulf %194, %191 : vector<8x64xf32>
    %196 = arith.addf %193, %195 : vector<8x64xf32>
    %197 = vector.extract_strided_slice %189 {offsets = [0, 128], sizes = [8, 64], strides = [1, 1]} : vector<8x192xf32> to vector<8x64xf32>
    %198 = math.tanh %196 : vector<8x64xf32>
    %199 = arith.mulf %197, %198 : vector<8x64xf32>
    %200 = vector.extract_strided_slice %199 {offsets = [0, 0], sizes = [8, 32], strides = [1, 1]} : vector<8x64xf32> to vector<8x32xf32>
    %c56_64 = arith.constant 56 : index
    %c0_65 = arith.constant 0 : index
    %201 = vector.load %arg14[%c56_64, %c0_65] : memref<64x64xf32, #tpu.memory_space<vmem>>, vector<8x32xf32>
    tpu.vector_store %arg14[%c56_64, %c0_65], %200 {strides = array<i32>} : memref<64x64xf32, #tpu.memory_space<vmem>>, vector<8x32xf32>,
    %202 = vector.extract_strided_slice %199 {offsets = [0, 32], sizes = [8, 32], strides = [1, 1]} : vector<8x64xf32> to vector<8x32xf32>
    %c0_66 = arith.constant 0 : index
    %c32_67 = arith.constant 32 : index
    %203 = vector.load %arg14[%c0_66, %c32_67] : memref<64x64xf32, #tpu.memory_space<vmem>>, vector<8x32xf32>
    tpu.vector_store %arg14[%c0_66, %c32_67], %202 {strides = array<i32>} : memref<64x64xf32, #tpu.memory_space<vmem>>, vector<8x32xf32>,
    %c0_68 = arith.constant 0 : index
    %c0_69 = arith.constant 0 : index
    %204 = vector.load %arg14[%c0_68, %c0_69] : memref<64x64xf32, #tpu.memory_space<vmem>>, vector<64x64xf32>
    %c0_70 = arith.constant 0 : index
    %c0_71 = arith.constant 0 : index
    %205 = vector.load %arg4[%c0_70, %c0_71] : memref<64x128xf32, #tpu.memory_space<vmem>>, vector<64x128xf32>
    %206 = arith.truncf %204 : vector<64x64xf32> to vector<64x64xbf16>
    %207 = arith.truncf %205 : vector<64x128xf32> to vector<64x128xbf16>
    %cst_72 = arith.constant dense<0.000000e+00> : vector<64x128xf32>
    %208 = tpu.matmul %206, %207, %cst_72 {dimension_numbers = #tpu.dot_dimension_numbers<[1], [0], [0], [1], [0, 0, 1, 1], [], []>} : vector<64x64xbf16>, vector<64x128xbf16>, vector<64x128xf32> -> vector<64x128xf32>
    %c0_73 = arith.constant 0 : index
    %c0_74 = arith.constant 0 : index
    %209 = vector.load %arg6[%c0_73, %c0_74] : memref<1x128xf32, #tpu.memory_space<vmem>>, vector<1x128xf32>
    %210 = vector.broadcast %209 : vector<1x128xf32> to vector<64x128xf32>
    %211 = arith.addf %208, %210 : vector<64x128xf32>
    %c0_75 = arith.constant 0 : index
    %c0_76 = arith.constant 0 : index
    %212 = vector.load %arg15[%c0_75, %c0_76] : memref<64x128xf32, #tpu.memory_space<vmem>>, vector<64x128xf32>
    tpu.vector_store %arg15[%c0_75, %c0_76], %211 {strides = array<i32>} : memref<64x128xf32, #tpu.memory_space<vmem>>, vector<64x128xf32>,
    %c0_77 = arith.constant 0 : index
    %c0_78 = arith.constant 0 : index
    %213 = vector.load %arg5[%c0_77, %c0_78] : memref<32x128xf32, #tpu.memory_space<vmem>>, vector<32x128xf32>
    %214 = arith.truncf %213 : vector<32x128xf32> to vector<32x128xbf16>
    %cst_79 = arith.constant 0.000000e+00 : bf16
    %215 = vector.broadcast %cst_79 : bf16 to vector<8x32xbf16>
    %cst_80 = arith.constant 0.000000e+00 : f32
    %216 = vector.broadcast %cst_80 : f32 to vector<8x32xf32>
    %c0_81 = arith.constant 0 : index
    %c0_82 = arith.constant 0 : index
    %217 = vector.load %arg15[%c0_81, %c0_82] : memref<64x128xf32, #tpu.memory_space<vmem>>, vector<8x128xf32>
    %cst_83 = arith.constant dense<0.000000e+00> : vector<8x128xf32>
    %218 = tpu.matmul %215, %214, %cst_83 {dimension_numbers = #tpu.dot_dimension_numbers<[1], [0], [0], [1], [0, 0, 1, 1], [], []>} : vector<8x32xbf16>, vector<32x128xbf16>, vector<8x128xf32> -> vector<8x128xf32>
    %219 = arith.addf %217, %218 : vector<8x128xf32>
    %220 = vector.extract_strided_slice %219 {offsets = [0, 0], sizes = [8, 96], strides = [1, 1]} : vector<8x128xf32> to vector<8x96xf32>
    %221 = arith.negf %220 : vector<8x96xf32>
    %222 = math.exp %221 : vector<8x96xf32>
    %cst_84 = arith.constant 1.000000e+00 : f32
    %223 = vector.broadcast %cst_84 : f32 to vector<8x96xf32>
    %224 = arith.addf %223, %222 : vector<8x96xf32>
    %225 = arith.divf %223, %224 : vector<8x96xf32>
    %226 = vector.extract_strided_slice %219 {offsets = [0, 96], sizes = [8, 32], strides = [1, 1]} : vector<8x128xf32> to vector<8x32xf32>
    %227 = math.tanh %226 : vector<8x32xf32>
    %228 = vector.extract_strided_slice %225 {offsets = [0, 32], sizes = [8, 32], strides = [1, 1]} : vector<8x96xf32> to vector<8x32xf32>
    %229 = arith.mulf %228, %216 : vector<8x32xf32>
    %230 = vector.extract_strided_slice %225 {offsets = [0, 0], sizes = [8, 32], strides = [1, 1]} : vector<8x96xf32> to vector<8x32xf32>
    %231 = arith.mulf %230, %227 : vector<8x32xf32>
    %232 = arith.addf %229, %231 : vector<8x32xf32>
    %233 = vector.extract_strided_slice %225 {offsets = [0, 64], sizes = [8, 32], strides = [1, 1]} : vector<8x96xf32> to vector<8x32xf32>
    %234 = math.tanh %232 : vector<8x32xf32>
    %235 = arith.mulf %233, %234 : vector<8x32xf32>
    %236 = arith.truncf %235 : vector<8x32xf32> to vector<8x32xbf16>
    %c8_85 = arith.constant 8 : index
    %c0_86 = arith.constant 0 : index
    %237 = vector.load %arg15[%c8_85, %c0_86] : memref<64x128xf32, #tpu.memory_space<vmem>>, vector<8x128xf32>
    %cst_87 = arith.constant dense<0.000000e+00> : vector<8x128xf32>
    %238 = tpu.matmul %236, %214, %cst_87 {dimension_numbers = #tpu.dot_dimension_numbers<[1], [0], [0], [1], [0, 0, 1, 1], [], []>} : vector<8x32xbf16>, vector<32x128xbf16>, vector<8x128xf32> -> vector<8x128xf32>
    %239 = arith.addf %237, %238 : vector<8x128xf32>
    %240 = vector.extract_strided_slice %239 {offsets = [0, 0], sizes = [8, 96], strides = [1, 1]} : vector<8x128xf32> to vector<8x96xf32>
    %241 = arith.negf %240 : vector<8x96xf32>
    %242 = math.exp %241 : vector<8x96xf32>
    %cst_88 = arith.constant 1.000000e+00 : f32
    %243 = vector.broadcast %cst_88 : f32 to vector<8x96xf32>
    %244 = arith.addf %243, %242 : vector<8x96xf32>
    %245 = arith.divf %243, %244 : vector<8x96xf32>
    %246 = vector.extract_strided_slice %239 {offsets = [0, 96], sizes = [8, 32], strides = [1, 1]} : vector<8x128xf32> to vector<8x32xf32>
    %247 = math.tanh %246 : vector<8x32xf32>
    %248 = vector.extract_strided_slice %245 {offsets = [0, 32], sizes = [8, 32], strides = [1, 1]} : vector<8x96xf32> to vector<8x32xf32>
    %249 = arith.mulf %248, %232 : vector<8x32xf32>
    %250 = vector.extract_strided_slice %245 {offsets = [0, 0], sizes = [8, 32], strides = [1, 1]} : vector<8x96xf32> to vector<8x32xf32>
    %251 = arith.mulf %250, %247 : vector<8x32xf32>
    %252 = arith.addf %249, %251 : vector<8x32xf32>
    %253 = vector.extract_strided_slice %245 {offsets = [0, 64], sizes = [8, 32], strides = [1, 1]} : vector<8x96xf32> to vector<8x32xf32>
    %254 = math.tanh %252 : vector<8x32xf32>
    %255 = arith.mulf %253, %254 : vector<8x32xf32>
    %256 = arith.truncf %255 : vector<8x32xf32> to vector<8x32xbf16>
    %c16_89 = arith.constant 16 : index
    %c0_90 = arith.constant 0 : index
    %257 = vector.load %arg15[%c16_89, %c0_90] : memref<64x128xf32, #tpu.memory_space<vmem>>, vector<8x128xf32>
    %cst_91 = arith.constant dense<0.000000e+00> : vector<8x128xf32>
    %258 = tpu.matmul %256, %214, %cst_91 {dimension_numbers = #tpu.dot_dimension_numbers<[1], [0], [0], [1], [0, 0, 1, 1], [], []>} : vector<8x32xbf16>, vector<32x128xbf16>, vector<8x128xf32> -> vector<8x128xf32>
    %259 = arith.addf %257, %258 : vector<8x128xf32>
    %260 = vector.extract_strided_slice %259 {offsets = [0, 0], sizes = [8, 96], strides = [1, 1]} : vector<8x128xf32> to vector<8x96xf32>
    %261 = arith.negf %260 : vector<8x96xf32>
    %262 = math.exp %261 : vector<8x96xf32>
    %cst_92 = arith.constant 1.000000e+00 : f32
    %263 = vector.broadcast %cst_92 : f32 to vector<8x96xf32>
    %264 = arith.addf %263, %262 : vector<8x96xf32>
    %265 = arith.divf %263, %264 : vector<8x96xf32>
    %266 = vector.extract_strided_slice %259 {offsets = [0, 96], sizes = [8, 32], strides = [1, 1]} : vector<8x128xf32> to vector<8x32xf32>
    %267 = math.tanh %266 : vector<8x32xf32>
    %268 = vector.extract_strided_slice %265 {offsets = [0, 32], sizes = [8, 32], strides = [1, 1]} : vector<8x96xf32> to vector<8x32xf32>
    %269 = arith.mulf %268, %252 : vector<8x32xf32>
    %270 = vector.extract_strided_slice %265 {offsets = [0, 0], sizes = [8, 32], strides = [1, 1]} : vector<8x96xf32> to vector<8x32xf32>
    %271 = arith.mulf %270, %267 : vector<8x32xf32>
    %272 = arith.addf %269, %271 : vector<8x32xf32>
    %273 = vector.extract_strided_slice %265 {offsets = [0, 64], sizes = [8, 32], strides = [1, 1]} : vector<8x96xf32> to vector<8x32xf32>
    %274 = math.tanh %272 : vector<8x32xf32>
    %275 = arith.mulf %273, %274 : vector<8x32xf32>
    %276 = arith.truncf %275 : vector<8x32xf32> to vector<8x32xbf16>
    %c24_93 = arith.constant 24 : index
    %c0_94 = arith.constant 0 : index
    %277 = vector.load %arg15[%c24_93, %c0_94] : memref<64x128xf32, #tpu.memory_space<vmem>>, vector<8x128xf32>
    %cst_95 = arith.constant dense<0.000000e+00> : vector<8x128xf32>
    %278 = tpu.matmul %276, %214, %cst_95 {dimension_numbers = #tpu.dot_dimension_numbers<[1], [0], [0], [1], [0, 0, 1, 1], [], []>} : vector<8x32xbf16>, vector<32x128xbf16>, vector<8x128xf32> -> vector<8x128xf32>
    %279 = arith.addf %277, %278 : vector<8x128xf32>
    %280 = vector.extract_strided_slice %279 {offsets = [0, 0], sizes = [8, 96], strides = [1, 1]} : vector<8x128xf32> to vector<8x96xf32>
    %281 = arith.negf %280 : vector<8x96xf32>
    %282 = math.exp %281 : vector<8x96xf32>
    %cst_96 = arith.constant 1.000000e+00 : f32
    %283 = vector.broadcast %cst_96 : f32 to vector<8x96xf32>
    %284 = arith.addf %283, %282 : vector<8x96xf32>
    %285 = arith.divf %283, %284 : vector<8x96xf32>
    %286 = vector.extract_strided_slice %279 {offsets = [0, 96], sizes = [8, 32], strides = [1, 1]} : vector<8x128xf32> to vector<8x32xf32>
    %287 = math.tanh %286 : vector<8x32xf32>
    %288 = vector.extract_strided_slice %285 {offsets = [0, 32], sizes = [8, 32], strides = [1, 1]} : vector<8x96xf32> to vector<8x32xf32>
    %289 = arith.mulf %288, %272 : vector<8x32xf32>
    %290 = vector.extract_strided_slice %285 {offsets = [0, 0], sizes = [8, 32], strides = [1, 1]} : vector<8x96xf32> to vector<8x32xf32>
    %291 = arith.mulf %290, %287 : vector<8x32xf32>
    %292 = arith.addf %289, %291 : vector<8x32xf32>
    %293 = vector.extract_strided_slice %285 {offsets = [0, 64], sizes = [8, 32], strides = [1, 1]} : vector<8x96xf32> to vector<8x32xf32>
    %294 = math.tanh %292 : vector<8x32xf32>
    %295 = arith.mulf %293, %294 : vector<8x32xf32>
    %296 = arith.truncf %295 : vector<8x32xf32> to vector<8x32xbf16>
    %c32_97 = arith.constant 32 : index
    %c0_98 = arith.constant 0 : index
    %297 = vector.load %arg15[%c32_97, %c0_98] : memref<64x128xf32, #tpu.memory_space<vmem>>, vector<8x128xf32>
    %cst_99 = arith.constant dense<0.000000e+00> : vector<8x128xf32>
    %298 = tpu.matmul %296, %214, %cst_99 {dimension_numbers = #tpu.dot_dimension_numbers<[1], [0], [0], [1], [0, 0, 1, 1], [], []>} : vector<8x32xbf16>, vector<32x128xbf16>, vector<8x128xf32> -> vector<8x128xf32>
    %299 = arith.addf %297, %298 : vector<8x128xf32>
    %300 = vector.extract_strided_slice %299 {offsets = [0, 0], sizes = [8, 96], strides = [1, 1]} : vector<8x128xf32> to vector<8x96xf32>
    %301 = arith.negf %300 : vector<8x96xf32>
    %302 = math.exp %301 : vector<8x96xf32>
    %cst_100 = arith.constant 1.000000e+00 : f32
    %303 = vector.broadcast %cst_100 : f32 to vector<8x96xf32>
    %304 = arith.addf %303, %302 : vector<8x96xf32>
    %305 = arith.divf %303, %304 : vector<8x96xf32>
    %306 = vector.extract_strided_slice %299 {offsets = [0, 96], sizes = [8, 32], strides = [1, 1]} : vector<8x128xf32> to vector<8x32xf32>
    %307 = math.tanh %306 : vector<8x32xf32>
    %308 = vector.extract_strided_slice %305 {offsets = [0, 32], sizes = [8, 32], strides = [1, 1]} : vector<8x96xf32> to vector<8x32xf32>
    %309 = arith.mulf %308, %292 : vector<8x32xf32>
    %310 = vector.extract_strided_slice %305 {offsets = [0, 0], sizes = [8, 32], strides = [1, 1]} : vector<8x96xf32> to vector<8x32xf32>
    %311 = arith.mulf %310, %307 : vector<8x32xf32>
    %312 = arith.addf %309, %311 : vector<8x32xf32>
    %313 = vector.extract_strided_slice %305 {offsets = [0, 64], sizes = [8, 32], strides = [1, 1]} : vector<8x96xf32> to vector<8x32xf32>
    %314 = math.tanh %312 : vector<8x32xf32>
    %315 = arith.mulf %313, %314 : vector<8x32xf32>
    %316 = arith.truncf %315 : vector<8x32xf32> to vector<8x32xbf16>
    %c40_101 = arith.constant 40 : index
    %c0_102 = arith.constant 0 : index
    %317 = vector.load %arg15[%c40_101, %c0_102] : memref<64x128xf32, #tpu.memory_space<vmem>>, vector<8x128xf32>
    %cst_103 = arith.constant dense<0.000000e+00> : vector<8x128xf32>
    %318 = tpu.matmul %316, %214, %cst_103 {dimension_numbers = #tpu.dot_dimension_numbers<[1], [0], [0], [1], [0, 0, 1, 1], [], []>} : vector<8x32xbf16>, vector<32x128xbf16>, vector<8x128xf32> -> vector<8x128xf32>
    %319 = arith.addf %317, %318 : vector<8x128xf32>
    %320 = vector.extract_strided_slice %319 {offsets = [0, 0], sizes = [8, 96], strides = [1, 1]} : vector<8x128xf32> to vector<8x96xf32>
    %321 = arith.negf %320 : vector<8x96xf32>
    %322 = math.exp %321 : vector<8x96xf32>
    %cst_104 = arith.constant 1.000000e+00 : f32
    %323 = vector.broadcast %cst_104 : f32 to vector<8x96xf32>
    %324 = arith.addf %323, %322 : vector<8x96xf32>
    %325 = arith.divf %323, %324 : vector<8x96xf32>
    %326 = vector.extract_strided_slice %319 {offsets = [0, 96], sizes = [8, 32], strides = [1, 1]} : vector<8x128xf32> to vector<8x32xf32>
    %327 = math.tanh %326 : vector<8x32xf32>
    %328 = vector.extract_strided_slice %325 {offsets = [0, 32], sizes = [8, 32], strides = [1, 1]} : vector<8x96xf32> to vector<8x32xf32>
    %329 = arith.mulf %328, %312 : vector<8x32xf32>
    %330 = vector.extract_strided_slice %325 {offsets = [0, 0], sizes = [8, 32], strides = [1, 1]} : vector<8x96xf32> to vector<8x32xf32>
    %331 = arith.mulf %330, %327 : vector<8x32xf32>
    %332 = arith.addf %329, %331 : vector<8x32xf32>
    %333 = vector.extract_strided_slice %325 {offsets = [0, 64], sizes = [8, 32], strides = [1, 1]} : vector<8x96xf32> to vector<8x32xf32>
    %334 = math.tanh %332 : vector<8x32xf32>
    %335 = arith.mulf %333, %334 : vector<8x32xf32>
    %336 = arith.truncf %335 : vector<8x32xf32> to vector<8x32xbf16>
    %c48_105 = arith.constant 48 : index
    %c0_106 = arith.constant 0 : index
    %337 = vector.load %arg15[%c48_105, %c0_106] : memref<64x128xf32, #tpu.memory_space<vmem>>, vector<8x128xf32>
    %cst_107 = arith.constant dense<0.000000e+00> : vector<8x128xf32>
    %338 = tpu.matmul %336, %214, %cst_107 {dimension_numbers = #tpu.dot_dimension_numbers<[1], [0], [0], [1], [0, 0, 1, 1], [], []>} : vector<8x32xbf16>, vector<32x128xbf16>, vector<8x128xf32> -> vector<8x128xf32>
    %339 = arith.addf %337, %338 : vector<8x128xf32>
    %340 = vector.extract_strided_slice %339 {offsets = [0, 0], sizes = [8, 96], strides = [1, 1]} : vector<8x128xf32> to vector<8x96xf32>
    %341 = arith.negf %340 : vector<8x96xf32>
    %342 = math.exp %341 : vector<8x96xf32>
    %cst_108 = arith.constant 1.000000e+00 : f32
    %343 = vector.broadcast %cst_108 : f32 to vector<8x96xf32>
    %344 = arith.addf %343, %342 : vector<8x96xf32>
    %345 = arith.divf %343, %344 : vector<8x96xf32>
    %346 = vector.extract_strided_slice %339 {offsets = [0, 96], sizes = [8, 32], strides = [1, 1]} : vector<8x128xf32> to vector<8x32xf32>
    %347 = math.tanh %346 : vector<8x32xf32>
    %348 = vector.extract_strided_slice %345 {offsets = [0, 32], sizes = [8, 32], strides = [1, 1]} : vector<8x96xf32> to vector<8x32xf32>
    %349 = arith.mulf %348, %332 : vector<8x32xf32>
    %350 = vector.extract_strided_slice %345 {offsets = [0, 0], sizes = [8, 32], strides = [1, 1]} : vector<8x96xf32> to vector<8x32xf32>
    %351 = arith.mulf %350, %347 : vector<8x32xf32>
    %352 = arith.addf %349, %351 : vector<8x32xf32>
    %353 = vector.extract_strided_slice %345 {offsets = [0, 64], sizes = [8, 32], strides = [1, 1]} : vector<8x96xf32> to vector<8x32xf32>
    %354 = math.tanh %352 : vector<8x32xf32>
    %355 = arith.mulf %353, %354 : vector<8x32xf32>
    %356 = arith.truncf %355 : vector<8x32xf32> to vector<8x32xbf16>
    %c56_109 = arith.constant 56 : index
    %c0_110 = arith.constant 0 : index
    %357 = vector.load %arg15[%c56_109, %c0_110] : memref<64x128xf32, #tpu.memory_space<vmem>>, vector<8x128xf32>
    %cst_111 = arith.constant dense<0.000000e+00> : vector<8x128xf32>
    %358 = tpu.matmul %356, %214, %cst_111 {dimension_numbers = #tpu.dot_dimension_numbers<[1], [0], [0], [1], [0, 0, 1, 1], [], []>} : vector<8x32xbf16>, vector<32x128xbf16>, vector<8x128xf32> -> vector<8x128xf32>
    %359 = arith.addf %357, %358 : vector<8x128xf32>
    %360 = vector.extract_strided_slice %359 {offsets = [0, 0], sizes = [8, 96], strides = [1, 1]} : vector<8x128xf32> to vector<8x96xf32>
    %361 = arith.negf %360 : vector<8x96xf32>
    %362 = math.exp %361 : vector<8x96xf32>
    %cst_112 = arith.constant 1.000000e+00 : f32
    %363 = vector.broadcast %cst_112 : f32 to vector<8x96xf32>
    %364 = arith.addf %363, %362 : vector<8x96xf32>
    %365 = arith.divf %363, %364 : vector<8x96xf32>
    %366 = vector.extract_strided_slice %359 {offsets = [0, 96], sizes = [8, 32], strides = [1, 1]} : vector<8x128xf32> to vector<8x32xf32>
    %367 = math.tanh %366 : vector<8x32xf32>
    %368 = vector.extract_strided_slice %365 {offsets = [0, 32], sizes = [8, 32], strides = [1, 1]} : vector<8x96xf32> to vector<8x32xf32>
    %369 = arith.mulf %368, %352 : vector<8x32xf32>
    %370 = vector.extract_strided_slice %365 {offsets = [0, 0], sizes = [8, 32], strides = [1, 1]} : vector<8x96xf32> to vector<8x32xf32>
    %371 = arith.mulf %370, %367 : vector<8x32xf32>
    %372 = arith.addf %369, %371 : vector<8x32xf32>
    %373 = vector.extract_strided_slice %365 {offsets = [0, 64], sizes = [8, 32], strides = [1, 1]} : vector<8x96xf32> to vector<8x32xf32>
    %374 = math.tanh %372 : vector<8x32xf32>
    %375 = arith.mulf %373, %374 : vector<8x32xf32>
    %376 = arith.truncf %375 : vector<8x32xf32> to vector<8x32xbf16>
    %c56_113 = arith.constant 56 : index
    %c0_114 = arith.constant 0 : index
    %377 = vector.load %arg14[%c56_113, %c0_114] : memref<64x64xf32, #tpu.memory_space<vmem>>, vector<8x64xf32>
    %c0_115 = arith.constant 0 : index
    %c0_116 = arith.constant 0 : index
    %378 = vector.load %arg7[%c0_115, %c0_116] : memref<64x128xf32, #tpu.memory_space<vmem>>, vector<64x128xf32>
    %379 = arith.truncf %377 : vector<8x64xf32> to vector<8x64xbf16>
    %380 = arith.truncf %378 : vector<64x128xf32> to vector<64x128xbf16>
    %cst_117 = arith.constant dense<0.000000e+00> : vector<8x128xf32>
    %381 = tpu.matmul %379, %380, %cst_117 {dimension_numbers = #tpu.dot_dimension_numbers<[1], [0], [0], [1], [0, 0, 1, 1], [], []>} : vector<8x64xbf16>, vector<64x128xbf16>, vector<8x128xf32> -> vector<8x128xf32>
    %c0_118 = arith.constant 0 : index
    %c0_119 = arith.constant 0 : index
    %382 = vector.load %arg9[%c0_118, %c0_119] : memref<1x128xf32, #tpu.memory_space<vmem>>, vector<1x128xf32>
    %383 = vector.broadcast %382 : vector<1x128xf32> to vector<8x128xf32>
    %384 = arith.addf %381, %383 : vector<8x128xf32>
    %385 = vector.extract_strided_slice %384 {offsets = [0, 0], sizes = [8, 96], strides = [1, 1]} : vector<8x128xf32> to vector<8x96xf32>
    %386 = arith.negf %385 : vector<8x96xf32>
    %387 = math.exp %386 : vector<8x96xf32>
    %cst_120 = arith.constant 1.000000e+00 : f32
    %388 = vector.broadcast %cst_120 : f32 to vector<8x96xf32>
    %389 = arith.addf %388, %387 : vector<8x96xf32>
    %390 = arith.divf %388, %389 : vector<8x96xf32>
    %391 = vector.extract_strided_slice %390 {offsets = [0, 0], sizes = [8, 32], strides = [1, 1]} : vector<8x96xf32> to vector<8x32xf32>
    %392 = vector.extract_strided_slice %384 {offsets = [0, 96], sizes = [8, 32], strides = [1, 1]} : vector<8x128xf32> to vector<8x32xf32>
    %393 = math.tanh %392 : vector<8x32xf32>
    %394 = arith.mulf %391, %393 : vector<8x32xf32>
    %395 = vector.extract_strided_slice %390 {offsets = [0, 64], sizes = [8, 32], strides = [1, 1]} : vector<8x96xf32> to vector<8x32xf32>
    %396 = math.tanh %394 : vector<8x32xf32>
    %397 = arith.mulf %395, %396 : vector<8x32xf32>
    %398 = arith.truncf %397 : vector<8x32xf32> to vector<8x32xbf16>
    %c0_121 = arith.constant 0 : index
    %c0_122 = arith.constant 0 : index
    %399 = vector.load %arg10[%c0_121, %c0_122] : memref<64x8xf32, #tpu.memory_space<vmem>>, vector<32x8xf32>
    %400 = arith.truncf %399 : vector<32x8xf32> to vector<32x8xbf16>
    %cst_123 = arith.constant dense<0.000000e+00> : vector<8x8xf32>
    %401 = tpu.matmul %376, %400, %cst_123 {dimension_numbers = #tpu.dot_dimension_numbers<[1], [0], [0], [1], [0, 0, 1, 1], [], []>} : vector<8x32xbf16>, vector<32x8xbf16>, vector<8x8xf32> -> vector<8x8xf32>
    %c32_124 = arith.constant 32 : index
    %c0_125 = arith.constant 0 : index
    %402 = vector.load %arg10[%c32_124, %c0_125] : memref<64x8xf32, #tpu.memory_space<vmem>>, vector<32x8xf32>
    %403 = arith.truncf %402 : vector<32x8xf32> to vector<32x8xbf16>
    %cst_126 = arith.constant dense<0.000000e+00> : vector<8x8xf32>
    %404 = tpu.matmul %398, %403, %cst_126 {dimension_numbers = #tpu.dot_dimension_numbers<[1], [0], [0], [1], [0, 0, 1, 1], [], []>} : vector<8x32xbf16>, vector<32x8xbf16>, vector<8x8xf32> -> vector<8x8xf32>
    %405 = arith.addf %401, %404 : vector<8x8xf32>
    %c0_127 = arith.constant 0 : index
    %c0_128 = arith.constant 0 : index
    %406 = vector.load %arg11[%c0_127, %c0_128] : memref<1x8xf32, #tpu.memory_space<vmem>>, vector<1x8xf32>
    %407 = vector.broadcast %406 : vector<1x8xf32> to vector<8x8xf32>
    %408 = arith.addf %405, %407 : vector<8x8xf32>
    %c0_129 = arith.constant 0 : index
    %c0_130 = arith.constant 0 : index
    %409 = vector.load %arg12[%c0_129, %c0_130] : memref<8x8xf32, #tpu.memory_space<vmem>>, vector<8x8xf32>
    tpu.vector_store %arg12[%c0_129, %c0_130], %408 {strides = array<i32>} : memref<8x8xf32, #tpu.memory_space<vmem>>, vector<8x8xf32>,
    return
  }
}

</mosaic_0001>

<bundles_post_ra>
// kernel: tpu_custom_call.1
= control target key start
LH: loop header
LB: loop body
LE: loop exit
PB: predicated region body
PF: predicated region fallthrough
CT: control target
= control target key end

     0   :  { %17 = vsyncpa [#allocation6], 0  ;;  %s3034_s0 = inlined_call_operand.vmem [shape: f32[64,32], index: 0, kind: input, shape index: {}]   ;;  %s3035_s1 = inlined_call_operand.hbm [shape: f32[32,256], index: 1, kind: input, shape index: {}]   ;;  %s3036_s2 = inlined_call_operand.vmem [shape: f32[64,256], index: 2, kind: input, shape index: {}]   ;;  %s3037_s3 = inlined_call_operand.vmem [shape: f32[1,256], index: 3, kind: input, shape index: {}]   ;;  %s3038_s4 = inlined_call_operand.hbm [shape: f32[64,128], index: 4, kind: input, shape index: {}]   ;;  %s3039_s5 = inlined_call_operand.hbm [shape: f32[32,128], index: 5, kind: input, shape index: {}]   ;;  %s3040_s6 = inlined_call_operand.hbm [shape: f32[1,128], index: 6, kind: input, shape index: {}]   ;;  %s3041_s7 = inlined_call_operand.vmem [shape: f32[64,128], index: 7, kind: input, shape index: {}]   ;;  %s3042_s8 = inlined_call_operand.hbm [shape: f32[32,128], index: 8, kind: input, shape index: {}]   ;;  %s3043_s9 = inlined_call_operand.hbm [shape: f32[1,128], index: 9, kind: input, shape index: {}]   ;;  %s3044_s10 = inlined_call_operand.vmem [shape: f32[64,8], index: 10, kind: input, shape index: {}]   ;;  %s3045_s11 = inlined_call_operand.vmem [shape: f32[1,8], index: 11, kind: input, shape index: {}]   ;;  %s3046_s12 = inlined_call_operand.hbm [shape: f32[8,8], index: 12, kind: output, shape index: {}]  }
   0x1   :  { %18 = vsyncpa [#allocation9], 0 }
   0x2   :  { %19 = vsyncpa [#allocation12], 0 }
   0x3   :  { %20 = vsyncpa [#allocation15], 0 }
   0x4   :  { %21 = vsyncpa [#allocation7], 0  ;;  %s2401_s21 = smov [#allocation8]   ;;  %s2237_s25 = scalar_lea.hbm %s3038_s4, 1024 }
   0x5   :  { %s45_s22 = sshll.u32 %s2401_s21, 4  ;;  %p2238_p0 = scmp.ne.s32.totalorder %s3038_s4, %s2237_s25  ;;  %s46_s22 = int_to_ptr.vmem [resolvable:$true] %s45_s22 }
   0x6   :  { %p2241_p1 = scmp.lt.u32.totalorder %s2237_s25, %s3038_s4 }
   0x8   :  { %p2243_p2 = pnand %p2241_p1, %p2238_p0 }
   0xa   :  { %2246 = shalt.err (!%p2243_p2)
}
   0xb   :  { %s2247_s30 = scalar_lea.vmem %s46_s22, 1024  ;;  %p2252_p4 = scmp.lt.s32.totalorder %s46_s22, %s46_s22 }
   0xc   :  { %p2248_p3 = scmp.ne.s32.totalorder %s46_s22, %s2247_s30  ;;  %p2253_p5 = scmp.lt.s32.totalorder %s2247_s30, %s2247_s30 }
   0xe   :  { %p2254_p6 = por %p2253_p5, %p2252_p4 }
  0x10   :  { %p2255_p7 = pnand %p2254_p6, %p2248_p3 }
  0x12   :  { %2258 = shalt.err (!%p2255_p7)
}
  0x13   :  { %s2402_s13 = smov 128   ;;  %s2403_s14 = smov 8  }
  0x14   :  { %51 = dma.hbm_to_vmem [thread:$0]  %s3038_s4, 1024, %s46_s22, [#allocation9], %s2402_s13, %s2402_s13, %s2403_s14  }
  0x15   :  { %s2404_s17 = smov [#allocation11]   ;;  %s2405_s19 = smov [#allocation5]  }
  0x16   :  { %s70_s18 = sshll.u32 %s2404_s17, 4  ;;  %s29_s20 = sshll.u32 %s2405_s19, 4  ;;  %s71_s18 = int_to_ptr.vmem [resolvable:$true] %s70_s18  ;;  %s30_s20 = int_to_ptr.vmem [resolvable:$true] %s29_s20 }
  0x17   :  { %s2259_s24 = scalar_lea.hbm %s3040_s6, 16 }
  0x18   :  { %p2260_p8 = scmp.ne.s32.totalorder %s3040_s6, %s2259_s24  ;;  %p2263_p9 = scmp.lt.u32.totalorder %s2259_s24, %s3040_s6 }
  0x1a   :  { %p2265_p10 = pnand %p2263_p9, %p2260_p8 }
  0x1c   :  { %2268 = shalt.err (!%p2265_p10)
}
  0x1d   :  { %s2269_s4 = scalar_lea.vmem %s71_s18, 16  ;;  %s2273_s22 = scalar_lea.vmem %s71_s18, 32 }
  0x1e   :  { %p2270_p11 = scmp.ne.s32.totalorder %s71_s18, %s2269_s4  ;;  %p2274_p12 = scmp.lt.s32.totalorder %s71_s18, %s71_s18 }
  0x1f   :  { %p2275_p13 = scmp.lt.s32.totalorder %s2273_s22, %s2269_s4 }
  0x21   :  { %p2276_p0 = por %p2275_p13, %p2274_p12 }
  0x23   :  { %p2277_p1 = pnand %p2276_p0, %p2270_p11 }
  0x25   :  { %2280 = shalt.err (!%p2277_p1)
}
  0x26   :  { %73 = dma.hbm_to_vmem [thread:$0]  %s3040_s6, 16, %s71_s18, [#allocation12]  }
  0x27   :  { %s2281_s17 = scalar_lea.hbm %s3035_s1, 1024 }
  0x28   :  { %p2282_p2 = scmp.ne.s32.totalorder %s3035_s1, %s2281_s17  ;;  %p2285_p3 = scmp.lt.u32.totalorder %s2281_s17, %s3035_s1 }
  0x2a   :  { %p2287_p4 = pnand %p2285_p3, %p2282_p2 }
  0x2c   :  { %2290 = shalt.err (!%p2287_p4)
}
  0x2d   :  { %s2291_s25 = scalar_lea.vmem %s30_s20, 1024  ;;  %p2296_p6 = scmp.lt.s32.totalorder %s30_s20, %s30_s20 }
  0x2e   :  { %p2292_p5 = scmp.ne.s32.totalorder %s30_s20, %s2291_s25  ;;  %p2297_p7 = scmp.lt.s32.totalorder %s2291_s25, %s2291_s25 }
  0x30   :  { %p2298_p8 = por %p2297_p7, %p2296_p6 }
  0x32   :  { %p2299_p9 = pnand %p2298_p8, %p2292_p5 }
  0x34   :  { %2302 = shalt.err (!%p2299_p9)
}
  0x35   :  { %s2406_s6 = smov 256   ;;  %s2407_s18 = smov 16  }
  0x36   :  { %35 = dma.hbm_to_vmem [thread:$0]  %s3035_s1, 1024, %s30_s20, [#allocation6], %s2406_s6, %s2406_s6, %s2407_s18  }
  0x37   :  { %s2408_s28 = smov [#allocation10]   ;;  %s2409_s22 = smov [#allocation13]  }
  0x38   :  { %s57_s4 = sshll.u32 %s2408_s28, 4  ;;  %s81_s29 = sshll.u32 %s2409_s22, 4  ;;  %s58_s4 = int_to_ptr.vmem [resolvable:$true] %s57_s4  ;;  %s82_s29 = int_to_ptr.vmem [resolvable:$true] %s81_s29 }
  0x39   :  { %s2303_s16 = scalar_lea.hbm %s3039_s5, 512 }
  0x3a   :  { %p2304_p10 = scmp.ne.s32.totalorder %s3039_s5, %s2303_s16  ;;  %p2307_p11 = scmp.lt.u32.totalorder %s2303_s16, %s3039_s5 }
  0x3c   :  { %p2309_p12 = pnand %p2307_p11, %p2304_p10 }
  0x3e   :  { %2312 = shalt.err (!%p2309_p12)
}
  0x3f   :  { %s2313_s1 = scalar_lea.vmem %s58_s4, 512  ;;  %p2318_p0 = scmp.lt.s32.totalorder %s58_s4, %s58_s4 }
  0x40   :  { %p2314_p13 = scmp.ne.s32.totalorder %s58_s4, %s2313_s1  ;;  %p2319_p1 = scmp.lt.s32.totalorder %s2313_s1, %s2313_s1 }
  0x42   :  { %p2320_p2 = por %p2319_p1, %p2318_p0 }
  0x44   :  { %p2321_p3 = pnand %p2320_p2, %p2314_p13 }
  0x46   :  { %2324 = shalt.err (!%p2321_p3)
}
  0x47   :  { %63 = dma.hbm_to_vmem [thread:$0]  %s3039_s5, 512, %s58_s4, [#allocation9], %s2402_s13, %s2402_s13, %s2403_s14  }
  0x48   :  { %s2325_s18 = scalar_lea.hbm %s3042_s8, 512 }
  0x49   :  { %p2326_p4 = scmp.ne.s32.totalorder %s3042_s8, %s2325_s18  ;;  %p2329_p5 = scmp.lt.u32.totalorder %s2325_s18, %s3042_s8 }
  0x4b   :  { %p2331_p6 = pnand %p2329_p5, %p2326_p4 }
  0x4d   :  { %2334 = shalt.err (!%p2331_p6)
}
  0x4e   :  { %s2335_s30 = scalar_lea.vmem %s82_s29, 512  ;;  %p2340_p8 = scmp.lt.s32.totalorder %s82_s29, %s82_s29 }
  0x4f   :  { %p2336_p7 = scmp.ne.s32.totalorder %s82_s29, %s2335_s30  ;;  %p2341_p9 = scmp.lt.s32.totalorder %s2335_s30, %s2335_s30 }
  0x51   :  { %p2342_p10 = por %p2341_p9, %p2340_p8 }
  0x53   :  { %p2343_p11 = pnand %p2342_p10, %p2336_p7 }
  0x55   :  { %2346 = shalt.err (!%p2343_p11)
}
  0x56   :  { %87 = dma.hbm_to_vmem [thread:$0]  %s3042_s8, 512, %s82_s29, [#allocation12], %s2402_s13, %s2402_s13, %s2403_s14  }
  0x57   :  { %s2410_s15 = smov [#allocation14]   ;;  %s2347_s21 = scalar_lea.hbm %s3043_s9, 16 }
  0x58   :  { %s94_s16 = sshll.u32 %s2410_s15, 4  ;;  %p2348_p12 = scmp.ne.s32.totalorder %s3043_s9, %s2347_s21  ;;  %s95_s16 = int_to_ptr.vmem [resolvable:$true] %s94_s16 }
  0x59   :  { %p2351_p13 = scmp.lt.u32.totalorder %s2347_s21, %s3043_s9 }
  0x5b   :  { %p2353_p0 = pnand %p2351_p13, %p2348_p12 }
  0x5d   :  { %2356 = shalt.err (!%p2353_p0)
}
  0x5e   :  { %s2357_s25 = scalar_lea.vmem %s95_s16, 16  ;;  %s2361_s8 = scalar_lea.vmem %s95_s16, 32 }
  0x5f   :  { %p2358_p1 = scmp.ne.s32.totalorder %s95_s16, %s2357_s25  ;;  %p2362_p2 = scmp.lt.s32.totalorder %s95_s16, %s95_s16 }
  0x60   :  { %p2363_p3 = scmp.lt.s32.totalorder %s2361_s8, %s2357_s25 }
  0x62   :  { %p2364_p4 = por %p2363_p3, %p2362_p2 }
  0x64   :  { %p2365_p5 = pnand %p2364_p4, %p2358_p1 }
  0x66   :  { %2368 = shalt.err (!%p2365_p5)
}
  0x67   :  { %97 = dma.hbm_to_vmem [thread:$0]  %s3043_s9, 16, %s95_s16, [#allocation15]  }
  0x68   :  { %2391 = dma.done.wait [#allocation6], 1024  }
  0x69   :  { %2392 = vsyncadd [#allocation6], 4294966272 }
  0x6a   :  { %2393 = dma.done.wait [#allocation9], 1536  }
  0x6b   :  { %2394 = vsyncadd [#allocation9], 4294965760 }
  0x6c   :  { %2395 = dma.done.wait [#allocation12], 528  }
  0x6d   :  { %2396 = vsyncadd [#allocation12], 4294966768 }
  0x6e   :  { %2397 = dma.done.wait [#allocation15], 16  }
  0x6f   :  { %2398 = vsyncadd [#allocation15], 4294967280  ;;  %v2411_v0 = vmov 0   ;;  %v260_v1 = vld [vmem:[%s3036_s2 + $0x8] sm:$0xff]  ;;  %v262_v2 = vld [vmem:[%s3036_s2 + $0x18] sm:$0xff]  ;;  %vm157_vm0 = vcmask 261120   ;;  %v147_v40 = vlaneseq }
  0x70   :  { %202 = vmatprep.mubr.bf16.mxu0 %v2411_v0  ;;  %321 = vmatprep.mubr.bf16.mxu1 %v2411_v0  ;;  %v259_v3 = vld [vmem:[%s3036_s2] sm:$0xff]  ;;  %v2574_v4 = vpack.c.bf16 %v262_v2, %v260_v1  ;;  %v261_v5 = vld [vmem:[%s3036_s2 + $0x10] sm:$0xff]  ;;  %v130_v6 = vld [vmem:[#allocation5 + $0x8] sm:$0xff]  ;;  %vm363_vm1 = vcmask 523520   ;;  %vm285_vm2 = vcmask 523264   ;;  %vm2414_vm3 = vmmov 0  }
  0x71   :  { %v132_v7 = vld [vmem:[#allocation5 + $0x18] sm:$0xff]  ;;  %v2579_v8 = vpack.c.bf16 %v261_v5, %v259_v3  ;;  %v129_v10 = vld [vmem:[#allocation5] sm:$0xff]  ;;  %v131_v11 = vld [vmem:[#allocation5 + $0x10] sm:$0xff]  ;;  %v148_v41 = vshrl.u32 %v147_v40, 7  ;;  %s2416_s30 = smov [#allocation16]   ;;  %vm1829_vm4 = vcmask 64512  }
  0x72   :  { %v142_v9 = vpack.c.bf16 %v132_v7, %v130_v6  ;;  %v264_v12 = vld [vmem:[%s3036_s2 + $0x28] sm:$0xff]  ;;  %289 = vmatprep.subr.bf16.mxu1 %v2574_v4  ;;  %v141_v13 = vpack.c.bf16 %v131_v11, %v129_v10  ;;  %v266_v14 = vld [vmem:[%s3036_s2 + $0x38] sm:$0xff]  ;;  %v263_v15 = vld [vmem:[%s3036_s2 + $0x20] sm:$0xff]  ;;  %s1837_s5 = sshll.u32 %s2416_s30, 4  ;;  %s1838_s5 = int_to_ptr.vmem [resolvable:$true] %s1837_s5 }
  0x73   :  { %v265_v16 = vld [vmem:[%s3036_s2 + $0x30] sm:$0xff]  ;;  %290 = vmatpush1.bf16.msra.mxu1 %v2579_v8  ;;  %v2595_v17 = vpack.c.bf16 %v266_v14, %v264_v12  ;;  %v134_v19 = vld [vmem:[#allocation5 + $0x28] sm:$0xff]  ;;  %v136_v20 = vld [vmem:[#allocation5 + $0x38] sm:$0xff]  ;;  %v149_v42 = vsub.s32 0, %v148_v41  ;;  %v153_v44 = vsub.s32 1, %v148_v41  ;;  %p2374_p7 = scmp.lt.s32.totalorder %s1838_s5, %s1838_s5 }
  0x74   :  { %170 = vmatprep.subr.bf16.mxu0 %v142_v9  ;;  %v2597_v18 = vpack.c.bf16 %v265_v16, %v263_v15  ;;  %v133_v21 = vld [vmem:[#allocation5 + $0x20] sm:$0xff]  ;;  %v144_v22 = vpack.c.bf16 %v136_v20, %v134_v19  ;;  %v135_v23 = vld [vmem:[#allocation5 + $0x30] sm:$0xff]  ;;  %v268_v24 = vld [vmem:[%s3036_s2 + $0x48] sm:$0xff] }
  0x75   :  { %171 = vmatpush1.bf16.msra.mxu0 %v141_v13  ;;  %v270_v25 = vld [vmem:[%s3036_s2 + $0x58] sm:$0xff]  ;;  %291 = vmatprep.subr.bf16.mxu1 %v2595_v17  ;;  %v143_v26 = vpack.c.bf16 %v135_v23, %v133_v21  ;;  %v267_v28 = vld [vmem:[%s3036_s2 + $0x40] sm:$0xff]  ;;  %v269_v29 = vld [vmem:[%s3036_s2 + $0x50] sm:$0xff] }
  0x76   :  { %v2606_v27 = vpack.c.bf16 %v270_v25, %v268_v24  ;;  %v121_v30 = vld [vmem:[%s3034_s0] sm:$0xff]  ;;  %172 = vmatprep.subr.bf16.mxu0 %v144_v22  ;;  %v122_v31 = vld [vmem:[%s3034_s0 + $0x8] sm:$0xff]  ;;  %v274_v33 = vld [vmem:[%s3036_s2 + $0x78] sm:$0xff]  ;;  %v2627_v34 = vpack.c.bf16 %v269_v29, %v267_v28 }
  0x77   :  { %v272_v32 = vld [vmem:[%s3036_s2 + $0x68] sm:$0xff]  ;;  %292 = vmatpush1.bf16.msra.mxu1 %v2597_v18  ;;  %v137_v35 = vpack.c.bf16 %v122_v31, %v121_v30  ;;  %v271_v37 = vld [vmem:[%s3036_s2 + $0x60] sm:$0xff]  ;;  %v273_v38 = vld [vmem:[%s3036_s2 + $0x70] sm:$0xff] }
  0x78   :  { %293 = vmatprep.subr.bf16.mxu1 %v2606_v27  ;;  %v2630_v36 = vpack.c.bf16 %v274_v33, %v272_v32  ;;  %v2641_v39 = vpack.c.bf16 %v273_v38, %v271_v37  ;;  %v145_v43 = vld [vmem:[%s3037_s3] sm:$0x3]  ;;  %s2412_s3 = smov 64   ;;  %v124_v37 = vld [vmem:[%s3034_s0 + $0x18] sm:$0xff]  ;;  %v126_v41 = vld [vmem:[%s3034_s0 + $0x28] sm:$0xff] }
  0x79   :  { %173 = vmatpush1.bf16.msra.mxu0 %v143_v26  ;;  %v2668_v45 = vrot.slane %v145_v43, %v149_v42  ;;  %v2670_v47 = vrot.slane %v145_v43, %v153_v44  ;;  %v125_v40 = vld [vmem:[%s3034_s0 + $0x20] sm:$0xff]  ;;  %v127_v43 = vld [vmem:[%s3034_s0 + $0x30] sm:$0xff]  ;;  %v128_v44 = vld [vmem:[%s3034_s0 + $0x38] sm:$0xff] }
  0x7a   :  { %452 = vmatprep.subr.bf16.mxu0 %v2574_v4  ;;  %v139_v42 = vpack.c.bf16 %v126_v41, %v125_v40 }
  0x7b   :  { %294 = vmatpush1.bf16.msra.mxu1 %v2627_v34 }
  0x7c   :  { %1849 = vmatmul.mubr.msk.bf16.vlgmr.msra.gmra.mrb[0].mxu0 %vm157_vm0, %v137_v35  ;;  %295 = vmatprep.subr.bf16.mxu1 %v2630_v36  ;;  %v123_v35 = vld [vmem:[%s3034_s0 + $0x10] sm:$0xff]  ;;  %s2415_s0 = smov 32  }
  0x7d   :  { %453 = vmatpush1.bf16.msra.mxu0 %v2579_v8  ;;  %212 = vmatprep.mubr.bf16.mxu0 %v2411_v0  ;;  %v138_v38 = vpack.c.bf16 %v124_v37, %v123_v35 }
  0x7e   :  { %454 = vmatprep.subr.bf16.mxu0 %v2595_v17 }
  0x7f   :  { %296 = vmatpush1.bf16.msra.mxu1 %v2641_v39 }
  0x80   :  { %371 = vmatprep.subr.bf16.mxu1 %v2574_v4 }
  0x81   :  { %455 = vmatpush1.bf16.msra.mxu0 %v2597_v18 }
  0x82   :  { %456 = vmatprep.subr.bf16.mxu0 %v2606_v27  ;;  %322 = vmatmul.mubr.bf16.vlgmr.msra.gmra.mrb[0].mxu1 %v2411_v0 }
  0x83   :  { %372 = vmatpush1.bf16.msra.mxu1 %v2579_v8  ;;  %403 = vmatprep.mubr.bf16.mxu1 %v2411_v0 }
  0x84   :  { %373 = vmatprep.subr.bf16.mxu1 %v2595_v17  ;;  %1850 = vmatmul.mubr.msk.bf16.gmra.mrb[4].mxu0 %vm157_vm0, %v138_v38 }
  0x85   :  { %457 = vmatpush1.bf16.msra.mxu0 %v2627_v34  ;;  %222 = vmatprep.mubr.bf16.mxu0 %v2411_v0 }
  0x86   :  { %458 = vmatprep.subr.bf16.mxu0 %v2630_v36 }
  0x87   :  { %374 = vmatpush1.bf16.msra.mxu1 %v2597_v18 }
  0x88   :  { %375 = vmatprep.subr.bf16.mxu1 %v2606_v27 }
  0x89   :  { %459 = vmatpush1.bf16.msra.mxu0 %v2641_v39 }
  0x8a   :  { %614 = vmatprep.subr.bf16.mxu0 %v2574_v4 }
  0x8b   :  { %376 = vmatpush1.bf16.msra.mxu1 %v2627_v34 }
  0x8c   :  { %377 = vmatprep.subr.bf16.mxu1 %v2630_v36  ;;  %1851 = vmatmul.mubr.msk.bf16.gmra.mrb[8].mxu0 %vm157_vm0, %v139_v42 }
  0x8d   :  { %232 = vmatprep.mubr.bf16.mxu0 %v2411_v0 }
  0x8f   :  { %378 = vmatpush1.bf16.msra.mxu1 %v2641_v39 }
  0x90   :  { %533 = vmatprep.subr.bf16.mxu1 %v2574_v4 }
 0x14f   :  { %v204_v46 = vpop.f32.mrb[0].mxu0 }
 0x150   :  { %v206_v48 = vpop.f32.mrb[1].mxu0  ;;  %v205_v51 = vadd.f32 %v204_v46, %v2668_v45  ;;  %v140_v46 = vpack.c.bf16 %v128_v44, %v127_v43 }
 0x151   :  { %v208_v49 = vpop.f32.mrb[2].mxu0  ;;  %v207_v52 = vadd.f32 %v206_v48, %v2670_v47 }
 0x152   :  { %v210_v50 = vpop.f32.mrb[3].mxu0  ;;  %v209_v16 = vadd.f32 %v208_v49, %v2668_v45  ;;  %1852 = vmatmul.mubr.msk.bf16.gmra.mrb[12].mxu0 %vm157_vm0, %v140_v46 }
 0x153   :  { %v211_v19 = vadd.f32 %v210_v50, %v2670_v47  ;;  %484 = vmatprep.mubr.bf16.mxu0 %v2411_v0 }
 0x155   :  { %v323_v53 = vpop.f32.mrb[0].mxu1 }
 0x156   :  { %v330_v54 = vadd.f32 %v323_v53, %v205_v51  ;;  %v325_v55 = vpop.f32.mrb[1].mxu1 }
 0x157   :  { %v331_v56 = vadd.f32 %v325_v55, %v207_v52  ;;  %v327_v57 = vpop.f32.mrb[2].mxu1  ;;  %v214_v53 = vpop.f32.mrb[4].mxu0 }
 0x158   :  { %v328_v58 = vpop.f32.mrb[3].mxu1  ;;  %v1853_v60 = vmul.f32 -1.442695, %v330_v54  ;;  %v216_v54 = vpop.f32.mrb[5].mxu0 }
 0x159   :  { %2069 = vtanh.f32 %v331_v56  ;;  %v1854_v9 = vmul.f32 -1.442695, %v331_v56  ;;  %v2718_v55 = vpop.f32.mrb[6].mxu0 }
 0x15a   :  { %2071 = vpow2.f32 %v1853_v60  ;;  %v2720_v56 = vpop.f32.mrb[7].mxu0  ;;  %v219_v42 = vadd.f32 %v2718_v55, %v2668_v45 }
 0x15b   :  { %v221_v43 = vadd.f32 %v2720_v56, %v2670_v47 }
 0x15f   :  { %v2722_v57 = vpop.f32.mrb[8].mxu0 }
 0x160   :  { %v2724_v58 = vpop.f32.mrb[9].mxu0 }
 0x163   :  { %v2070_v59 = vpop.eup %2069 }
 0x164   :  { %347 = vrot.lane.b32.xlu0 %v2070_v59, %s2412_s3  ;;  %v2072_v61 = vpop.eup %2071  ;;  %v2726_v59 = vpop.f32.mrb[10].mxu0 }
 0x165   :  { %v338_v62 = vadd.f32 1.0, %v2072_v61  ;;  %v2728_v61 = vpop.f32.mrb[11].mxu0 }
 0x167   :  { %2073 = vrcp.f32 %v338_v62 }
 0x171   :  { %v2074_v63 = vpop.eup %2073 }
 0x172   :  { %v345_v3 = vmul.f32 0.0, %v2074_v63 }
 0x1d6   :  { %v348_v1 = vpop.permute.xlu0 %347 }
 0x1d7   :  { %v350_v2 = vmul.f32 %v2074_v63, %v348_v1 }
 0x1d9   :  { %352 = vrot.lane.b32.xlu0 %v350_v2, %s2412_s3 }
 0x225   :  { %v2730_v63 = vpop.f32.mrb[12].mxu0 }
 0x226   :  { %v2732_v1 = vpop.f32.mrb[13].mxu0 }
 0x227   :  { %v2734_v2 = vpop.f32.mrb[14].mxu0 }
 0x24b   :  { %v353_v5 = vpop.permute.xlu0 %352 }
 0x24c   :  { %v355_v6 = vadd.f32 %v353_v5, %v345_v3  ;;  %v2736_v3 = vpop.f32.mrb[15].mxu0 }
 0x24e   :  { %2075 = vtanh.f32 %v355_v6 }
 0x24f   :  { %2077 = vpow2.f32 %v1854_v9 }
 0x258   :  { %v2076_v7 = vpop.eup %2075 }
 0x259   :  { %358 = vrot.lane.b32.xlu1 %v2076_v7, %s2412_s3  ;;  %v2078_v10 = vpop.eup %2077 }
 0x25a   :  { %v339_v11 = vadd.f32 1.0, %v2078_v10  ;;  %v215_v10 = vadd.f32 %v214_v53, %v2668_v45 }
 0x25c   :  { %2079 = vrcp.f32 %v339_v11  ;;  %v217_v11 = vadd.f32 %v216_v54, %v2670_v47 }
 0x266   :  { %v2080_v12 = vpop.eup %2079 }
 0x2cb   :  { %v359_v13 = vpop.permute.xlu1 %358 }
 0x2cc   :  { %v361_v14 = vmul.f32 %v2080_v12, %v359_v13 }
 0x2ce   :  { %362 = vst.msk [vmem:[#allocation3] sm:$0xff] %vm157_vm0, %v361_v14  ;;  %v365_v15 = vpack.c.bf16 %v361_v14, %v361_v14 }
 0x2cf   :  { %364 = vst.msk [vmem:[#allocation3 + $0x38] sm:$0xff] %vm363_vm1, %v361_v14 }
 0x2d0   :  { %1855 = vmatmul.mubr.msk.bf16.vlgmr.msra.gmra.mrb[4].mxu1 %vm285_vm2, %v365_v15 }
 0x2d1   :  { %534 = vmatpush1.bf16.msra.mxu1 %v2579_v8  ;;  %565 = vmatprep.mubr.bf16.mxu1 %v2411_v0 }
 0x2d2   :  { %535 = vmatprep.subr.bf16.mxu1 %v2595_v17 }
 0x2d5   :  { %536 = vmatpush1.bf16.msra.mxu1 %v2597_v18 }
 0x2d6   :  { %537 = vmatprep.subr.bf16.mxu1 %v2606_v27 }
 0x2d9   :  { %538 = vmatpush1.bf16.msra.mxu1 %v2627_v34 }
 0x2da   :  { %539 = vmatprep.subr.bf16.mxu1 %v2630_v36 }
 0x2dd   :  { %540 = vmatpush1.bf16.msra.mxu1 %v2641_v39 }
 0x2de   :  { %695 = vmatprep.subr.bf16.mxu1 %v2574_v4 }
 0x3a3   :  { %v405_v20 = vpop.f32.mrb[4].mxu1 }
 0x3a4   :  { %v412_v21 = vadd.f32 %v405_v20, %v209_v16  ;;  %v407_v22 = vpop.f32.mrb[5].mxu1 }
 0x3a5   :  { %v413_v23 = vadd.f32 %v407_v22, %v211_v19  ;;  %v409_v24 = vpop.f32.mrb[6].mxu1 }
 0x3a6   :  { %v410_v25 = vpop.f32.mrb[7].mxu1  ;;  %v1856_v28 = vmul.f32 -1.442695, %v412_v21 }
 0x3a7   :  { %2081 = vtanh.f32 %v413_v23  ;;  %v1857_v52 = vmul.f32 -1.442695, %v413_v23 }
 0x3a8   :  { %2083 = vpow2.f32 %v1856_v28 }
 0x3b1   :  { %v2082_v26 = vpop.eup %2081 }
 0x3b2   :  { %429 = vrot.lane.b32.xlu1 %v2082_v26, %s2412_s3  ;;  %v2084_v29 = vpop.eup %2083 }
 0x3b3   :  { %v420_v30 = vadd.f32 1.0, %v2084_v29 }
 0x3b5   :  { %2085 = vrcp.f32 %v420_v30 }
 0x3bf   :  { %v2086_v31 = vpop.eup %2085 }
 0x3c0   :  { %v427_v48 = vmul.f32 %v2086_v31, %v355_v6 }
 0x424   :  { %v430_v32 = vpop.permute.xlu1 %429 }
 0x425   :  { %v432_v33 = vmul.f32 %v2086_v31, %v430_v32 }
 0x427   :  { %434 = vrot.lane.b32.xlu0 %v432_v33, %s2412_s3 }
 0x499   :  { %v435_v49 = vpop.permute.xlu0 %434 }
 0x49a   :  { %v437_v50 = vadd.f32 %v435_v49, %v427_v48 }
 0x49c   :  { %2087 = vtanh.f32 %v437_v50 }
 0x49d   :  { %2089 = vpow2.f32 %v1857_v52 }
 0x4a6   :  { %v2088_v51 = vpop.eup %2087 }
 0x4a7   :  { %440 = vrot.lane.b32.xlu1 %v2088_v51, %s2412_s3  ;;  %v2090_v60 = vpop.eup %2089 }
 0x4a8   :  { %v421_v62 = vadd.f32 1.0, %v2090_v60 }
 0x4aa   :  { %2091 = vrcp.f32 %v421_v62 }
 0x4b4   :  { %v2092_v5 = vpop.eup %2091 }
 0x519   :  { %v441_v6 = vpop.permute.xlu1 %440 }
 0x51a   :  { %v443_v7 = vmul.f32 %v2092_v5, %v441_v6 }
 0x51c   :  { %444 = vst.msk [vmem:[#allocation3 + $0x8] sm:$0xff] %vm157_vm0, %v443_v7  ;;  %v446_v9 = vpack.c.bf16 %v443_v7, %v443_v7 }
 0x51d   :  { %445 = vst.msk [vmem:[#allocation3 + $0x30] sm:$0xff] %vm363_vm1, %v443_v7 }
 0x51e   :  { %1858 = vmatmul.mubr.msk.bf16.vlgmr.msra.gmra.mrb[16].mxu0 %vm285_vm2, %v446_v9 }
 0x51f   :  { %615 = vmatpush1.bf16.msra.mxu0 %v2579_v8  ;;  %646 = vmatprep.mubr.bf16.mxu0 %v2411_v0 }
 0x520   :  { %616 = vmatprep.subr.bf16.mxu0 %v2595_v17 }
 0x523   :  { %617 = vmatpush1.bf16.msra.mxu0 %v2597_v18 }
 0x524   :  { %618 = vmatprep.subr.bf16.mxu0 %v2606_v27 }
 0x527   :  { %619 = vmatpush1.bf16.msra.mxu0 %v2627_v34 }
 0x528   :  { %620 = vmatprep.subr.bf16.mxu0 %v2630_v36 }
 0x52b   :  { %621 = vmatpush1.bf16.msra.mxu0 %v2641_v39 }
 0x52c   :  { %776 = vmatprep.subr.bf16.mxu0 %v2574_v4 }
 0x5f1   :  { %v486_v12 = vpop.f32.mrb[16].mxu0 }
 0x5f2   :  { %v493_v13 = vadd.f32 %v486_v12, %v215_v10  ;;  %v488_v14 = vpop.f32.mrb[17].mxu0 }
 0x5f3   :  { %v494_v15 = vadd.f32 %v488_v14, %v217_v11  ;;  %v490_v16 = vpop.f32.mrb[18].mxu0 }
 0x5f4   :  { %v491_v19 = vpop.f32.mrb[19].mxu0  ;;  %v1859_v21 = vmul.f32 -1.442695, %v493_v13  ;;  %v225_v16 = vadd.f32 %v2722_v57, %v2668_v45 }
 0x5f5   :  { %2093 = vtanh.f32 %v494_v15  ;;  %v1860_v32 = vmul.f32 -1.442695, %v494_v15  ;;  %v227_v19 = vadd.f32 %v2724_v58, %v2670_v47 }
 0x5f6   :  { %2095 = vpow2.f32 %v1859_v21 }
 0x5ff   :  { %v2094_v20 = vpop.eup %2093 }
 0x600   :  { %510 = vrot.lane.b32.xlu0 %v2094_v20, %s2412_s3  ;;  %v2096_v22 = vpop.eup %2095 }
 0x601   :  { %v501_v23 = vadd.f32 1.0, %v2096_v22 }
 0x603   :  { %2097 = vrcp.f32 %v501_v23 }
 0x60d   :  { %v2098_v24 = vpop.eup %2097 }
 0x60e   :  { %v508_v28 = vmul.f32 %v2098_v24, %v437_v50 }
 0x672   :  { %v511_v25 = vpop.permute.xlu0 %510 }
 0x673   :  { %v513_v26 = vmul.f32 %v2098_v24, %v511_v25 }
 0x675   :  { %515 = vrot.lane.b32.xlu1 %v513_v26, %s2412_s3 }
 0x6e7   :  { %v516_v29 = vpop.permute.xlu1 %515 }
 0x6e8   :  { %v518_v30 = vadd.f32 %v516_v29, %v508_v28 }
 0x6ea   :  { %2099 = vtanh.f32 %v518_v30 }
 0x6eb   :  { %2101 = vpow2.f32 %v1860_v32 }
 0x6f4   :  { %v2100_v31 = vpop.eup %2099 }
 0x6f5   :  { %521 = vrot.lane.b32.xlu0 %v2100_v31, %s2412_s3  ;;  %v2102_v33 = vpop.eup %2101 }
 0x6f6   :  { %v502_v35 = vadd.f32 1.0, %v2102_v33 }
 0x6f8   :  { %2103 = vrcp.f32 %v502_v35 }
 0x702   :  { %v2104_v37 = vpop.eup %2103 }
 0x767   :  { %v522_v38 = vpop.permute.xlu0 %521 }
 0x768   :  { %v524_v40 = vmul.f32 %v2104_v37, %v522_v38 }
 0x76a   :  { %525 = vst.msk [vmem:[#allocation3 + $0x10] sm:$0xff] %vm157_vm0, %v524_v40  ;;  %v527_v41 = vpack.c.bf16 %v524_v40, %v524_v40 }
 0x76b   :  { %526 = vst.msk [vmem:[#allocation3 + $0x28] sm:$0xff] %vm363_vm1, %v524_v40 }
 0x76c   :  { %1861 = vmatmul.mubr.msk.bf16.vlgmr.msra.gmra.mrb[8].mxu1 %vm285_vm2, %v527_v41 }
 0x76d   :  { %696 = vmatpush1.bf16.msra.mxu1 %v2579_v8  ;;  %727 = vmatprep.mubr.bf16.mxu1 %v2411_v0 }
 0x76e   :  { %697 = vmatprep.subr.bf16.mxu1 %v2595_v17 }
 0x771   :  { %698 = vmatpush1.bf16.msra.mxu1 %v2597_v18 }
 0x772   :  { %699 = vmatprep.subr.bf16.mxu1 %v2606_v27 }
 0x775   :  { %700 = vmatpush1.bf16.msra.mxu1 %v2627_v34 }
 0x776   :  { %701 = vmatprep.subr.bf16.mxu1 %v2630_v36 }
 0x779   :  { %702 = vmatpush1.bf16.msra.mxu1 %v2641_v39 }
 0x77a   :  { %857 = vmatprep.subr.bf16.mxu1 %v2574_v4 }
 0x83f   :  { %v567_v44 = vpop.f32.mrb[8].mxu1 }
 0x840   :  { %v574_v46 = vadd.f32 %v567_v44, %v219_v42  ;;  %v569_v48 = vpop.f32.mrb[9].mxu1 }
 0x841   :  { %v575_v49 = vadd.f32 %v569_v48, %v221_v43  ;;  %v571_v50 = vpop.f32.mrb[10].mxu1  ;;  %v229_v48 = vadd.f32 %v2726_v59, %v2668_v45 }
 0x842   :  { %v572_v51 = vpop.f32.mrb[11].mxu1  ;;  %v1862_v53 = vmul.f32 -1.442695, %v574_v46 }
 0x843   :  { %2105 = vtanh.f32 %v575_v49  ;;  %v1863_v9 = vmul.f32 -1.442695, %v575_v49 }
 0x844   :  { %2107 = vpow2.f32 %v1862_v53 }
 0x84d   :  { %v2106_v52 = vpop.eup %2105 }
 0x84e   :  { %591 = vrot.lane.b32.xlu1 %v2106_v52, %s2412_s3  ;;  %v2108_v54 = vpop.eup %2107 }
 0x84f   :  { %v582_v4 = vadd.f32 1.0, %v2108_v54 }
 0x851   :  { %2109 = vrcp.f32 %v582_v4 }
 0x85b   :  { %v2110_v60 = vpop.eup %2109 }
 0x85c   :  { %v589_v56 = vmul.f32 %v2110_v60, %v518_v30 }
 0x8c0   :  { %v592_v55 = vpop.permute.xlu1 %591 }
 0x8c1   :  { %v594_v62 = vmul.f32 %v2110_v60, %v592_v55 }
 0x8c3   :  { %596 = vrot.lane.b32.xlu0 %v594_v62, %s2412_s3 }
 0x935   :  { %v597_v5 = vpop.permute.xlu0 %596 }
 0x936   :  { %v599_v6 = vadd.f32 %v597_v5, %v589_v56 }
 0x938   :  { %2111 = vtanh.f32 %v599_v6 }
 0x939   :  { %2113 = vpow2.f32 %v1863_v9 }
 0x942   :  { %v2112_v7 = vpop.eup %2111 }
 0x943   :  { %602 = vrot.lane.b32.xlu1 %v2112_v7, %s2412_s3  ;;  %v2114_v10 = vpop.eup %2113 }
 0x944   :  { %v583_v11 = vadd.f32 1.0, %v2114_v10 }
 0x946   :  { %2115 = vrcp.f32 %v583_v11  ;;  %v235_v11 = vadd.f32 %v2730_v63, %v2668_v45 }
 0x950   :  { %v2116_v12 = vpop.eup %2115 }
 0x9b5   :  { %v603_v13 = vpop.permute.xlu1 %602 }
 0x9b6   :  { %v605_v14 = vmul.f32 %v2116_v12, %v603_v13  ;;  %v237_v12 = vadd.f32 %v2732_v1, %v2670_v47 }
 0x9b8   :  { %606 = vst.msk [vmem:[#allocation3 + $0x18] sm:$0xff] %vm157_vm0, %v605_v14  ;;  %v608_v15 = vpack.c.bf16 %v605_v14, %v605_v14 }
 0x9b9   :  { %607 = vst.msk [vmem:[#allocation3 + $0x20] sm:$0xff] %vm363_vm1, %v605_v14 }
 0x9ba   :  { %1864 = vmatmul.mubr.msk.bf16.vlgmr.msra.gmra.mrb[20].mxu0 %vm285_vm2, %v608_v15 }
 0x9bb   :  { %777 = vmatpush1.bf16.msra.mxu0 %v2579_v8  ;;  %808 = vmatprep.mubr.bf16.mxu0 %v2411_v0 }
 0x9bc   :  { %778 = vmatprep.subr.bf16.mxu0 %v2595_v17 }
 0x9bf   :  { %779 = vmatpush1.bf16.msra.mxu0 %v2597_v18 }
 0x9c0   :  { %780 = vmatprep.subr.bf16.mxu0 %v2606_v27 }
 0x9c3   :  { %781 = vmatpush1.bf16.msra.mxu0 %v2627_v34 }
 0x9c4   :  { %782 = vmatprep.subr.bf16.mxu0 %v2630_v36 }
 0x9c7   :  { %783 = vmatpush1.bf16.msra.mxu0 %v2641_v39 }
 0xa8d   :  { %v648_v20 = vpop.f32.mrb[20].mxu0 }
 0xa8e   :  { %v655_v21 = vadd.f32 %v648_v20, %v225_v16  ;;  %v650_v22 = vpop.f32.mrb[21].mxu0 }
 0xa8f   :  { %v656_v23 = vadd.f32 %v650_v22, %v227_v19  ;;  %v652_v24 = vpop.f32.mrb[22].mxu0 }
 0xa90   :  { %v653_v25 = vpop.f32.mrb[23].mxu0  ;;  %v1865_v28 = vmul.f32 -1.442695, %v655_v21 }
 0xa91   :  { %2117 = vtanh.f32 %v656_v23  ;;  %v1866_v38 = vmul.f32 -1.442695, %v656_v23 }
 0xa92   :  { %2119 = vpow2.f32 %v1865_v28 }
 0xa9b   :  { %v2118_v26 = vpop.eup %2117 }
 0xa9c   :  { %672 = vrot.lane.b32.xlu0 %v2118_v26, %s2412_s3  ;;  %v2120_v29 = vpop.eup %2119 }
 0xa9d   :  { %v663_v30 = vadd.f32 1.0, %v2120_v29 }
 0xa9f   :  { %2121 = vrcp.f32 %v663_v30 }
 0xaa9   :  { %v2122_v31 = vpop.eup %2121 }
 0xaaa   :  { %v670_v58 = vmul.f32 %v2122_v31, %v599_v6 }
 0xb0e   :  { %v673_v57 = vpop.permute.xlu0 %672 }
 0xb0f   :  { %v675_v32 = vmul.f32 %v2122_v31, %v673_v57 }
 0xb11   :  { %677 = vrot.lane.b32.xlu1 %v675_v32, %s2412_s3 }
 0xb83   :  { %v678_v33 = vpop.permute.xlu1 %677 }
 0xb84   :  { %v680_v35 = vadd.f32 %v678_v33, %v670_v58 }
 0xb86   :  { %2123 = vtanh.f32 %v680_v35 }
 0xb87   :  { %2125 = vpow2.f32 %v1866_v38  ;;  %v239_v38 = vadd.f32 %v2734_v2, %v2668_v45 }
 0xb90   :  { %v2124_v37 = vpop.eup %2123 }
 0xb91   :  { %683 = vrot.lane.b32.xlu0 %v2124_v37, %s2412_s3  ;;  %v2126_v40 = vpop.eup %2125 }
 0xb92   :  { %v664_v41 = vadd.f32 1.0, %v2126_v40  ;;  %v241_v40 = vadd.f32 %v2736_v3, %v2670_v47  ;;  %v941_v3 = vld [vmem:[#allocation8 + $0x8] sm:$0xff] }
 0xb94   :  { %2127 = vrcp.f32 %v664_v41 }
 0xb9e   :  { %v2128_v42 = vpop.eup %2127 }
 0xc03   :  { %v684_v43 = vpop.permute.xlu0 %683 }
 0xc04   :  { %v686_v44 = vmul.f32 %v2128_v42, %v684_v43 }
 0xc06   :  { %687 = vst.msk [vmem:[#allocation3 + $0x20] sm:$0xff] %vm157_vm0, %v686_v44  ;;  %v689_v46 = vpack.c.bf16 %v686_v44, %v686_v44 }
 0xc07   :  { %688 = vst.msk [vmem:[#allocation3 + $0x18] sm:$0xff] %vm363_vm1, %v686_v44 }
 0xc08   :  { %1867 = vmatmul.mubr.msk.bf16.vlgmr.msra.gmra.mrb[12].mxu1 %vm285_vm2, %v689_v46 }
 0xc09   :  { %858 = vmatpush1.bf16.msra.mxu1 %v2579_v8  ;;  %889 = vmatprep.mubr.bf16.mxu1 %v2411_v0  ;;  %v231_v8 = vadd.f32 %v2728_v61, %v2670_v47  ;;  %v940_v47 = vld [vmem:[#allocation8] sm:$0xff] }
 0xc0a   :  { %859 = vmatprep.subr.bf16.mxu1 %v2595_v17 }
 0xc0d   :  { %860 = vmatpush1.bf16.msra.mxu1 %v2597_v18 }
 0xc0e   :  { %861 = vmatprep.subr.bf16.mxu1 %v2606_v27 }
 0xc11   :  { %862 = vmatpush1.bf16.msra.mxu1 %v2627_v34 }
 0xc12   :  { %863 = vmatprep.subr.bf16.mxu1 %v2630_v36 }
 0xc15   :  { %864 = vmatpush1.bf16.msra.mxu1 %v2641_v39 }
 0xcdb   :  { %v729_v49 = vpop.f32.mrb[12].mxu1 }
 0xcdc   :  { %v736_v50 = vadd.f32 %v729_v49, %v229_v48  ;;  %v731_v51 = vpop.f32.mrb[13].mxu1 }
 0xcdd   :  { %v737_v17 = vadd.f32 %v731_v51, %v231_v8  ;;  %v733_v52 = vpop.f32.mrb[14].mxu1 }
 0xcde   :  { %v734_v18 = vpop.f32.mrb[15].mxu1  ;;  %v1868_v34 = vmul.f32 -1.442695, %v736_v50  ;;  %v952_v52 = vpack.c.bf16 %v941_v3, %v940_v47 }
 0xcdf   :  { %2129 = vtanh.f32 %v737_v17  ;;  %v1869_v62 = vmul.f32 -1.442695, %v737_v17 }
 0xce0   :  { %2131 = vpow2.f32 %v1868_v34  ;;  %1945 = vmatprep.subr.bf16.mxu0 %v952_v52  ;;  %v943_v34 = vld [vmem:[#allocation8 + $0x18] sm:$0xff] }
 0xce9   :  { %v2130_v27 = vpop.eup %2129 }
 0xcea   :  { %753 = vrot.lane.b32.xlu1 %v2130_v27, %s2412_s3  ;;  %v2132_v36 = vpop.eup %2131  ;;  %v942_v27 = vld [vmem:[#allocation8 + $0x10] sm:$0xff] }
 0xceb   :  { %v744_v39 = vadd.f32 1.0, %v2132_v36 }
 0xced   :  { %2133 = vrcp.f32 %v744_v39  ;;  %v953_v39 = vpack.c.bf16 %v943_v34, %v942_v27 }
 0xcf7   :  { %v2134_v53 = vpop.eup %2133 }
 0xcf8   :  { %v751_v61 = vmul.f32 %v2134_v53, %v680_v35 }
 0xd5c   :  { %v754_v59 = vpop.permute.xlu1 %753 }
 0xd5d   :  { %v756_v54 = vmul.f32 %v2134_v53, %v754_v59  ;;  %v944_v59 = vld [vmem:[#allocation8 + $0x20] sm:$0xff] }
 0xd5f   :  { %758 = vrot.lane.b32.xlu0 %v756_v54, %s2412_s3  ;;  %v945_v54 = vld [vmem:[#allocation8 + $0x28] sm:$0xff] }
 0xdd1   :  { %v759_v4 = vpop.permute.xlu0 %758 }
 0xdd2   :  { %v761_v60 = vadd.f32 %v759_v4, %v751_v61  ;;  %v1048_v61 = vld [vmem:[#allocation10] sm:$0xff]  ;;  %v954_v4 = vpack.c.bf16 %v945_v54, %v944_v59 }
 0xdd4   :  { %2135 = vtanh.f32 %v761_v60 }
 0xdd5   :  { %2137 = vpow2.f32 %v1869_v62  ;;  %v946_v62 = vld [vmem:[#allocation8 + $0x30] sm:$0xff] }
 0xdde   :  { %v2136_v55 = vpop.eup %2135 }
 0xddf   :  { %764 = vrot.lane.b32.xlu1 %v2136_v55, %s2412_s3  ;;  %v2138_v56 = vpop.eup %2137  ;;  %v1049_v55 = vld [vmem:[#allocation10 + $0x8] sm:$0xff] }
 0xde0   :  { %v745_v5 = vadd.f32 1.0, %v2138_v56  ;;  %v947_v56 = vld [vmem:[#allocation8 + $0x38] sm:$0xff] }
 0xde2   :  { %2139 = vrcp.f32 %v745_v5  ;;  %v2830_v5 = vpack.c.bf16 %v1049_v55, %v1048_v61 }
 0xdec   :  { %v2140_v6 = vpop.eup %2139 }
 0xe51   :  { %v765_v7 = vpop.permute.xlu1 %764 }
 0xe52   :  { %v767_v9 = vmul.f32 %v2140_v6, %v765_v7  ;;  %v955_v6 = vpack.c.bf16 %v947_v56, %v946_v62  ;;  %v1050_v7 = vld [vmem:[#allocation10 + $0x10] sm:$0xff] }
 0xe54   :  { %768 = vst.msk [vmem:[#allocation3 + $0x28] sm:$0xff] %vm157_vm0, %v767_v9  ;;  %v770_v10 = vpack.c.bf16 %v767_v9, %v767_v9 }
 0xe55   :  { %769 = vst.msk [vmem:[#allocation3 + $0x10] sm:$0xff] %vm363_vm1, %v767_v9  ;;  %v1051_v9 = vld [vmem:[#allocation10 + $0x18] sm:$0xff] }
 0xe56   :  { %1870 = vmatmul.mubr.msk.bf16.vlgmr.msra.gmra.mrb[24].mxu0 %vm285_vm2, %v770_v10  ;;  %v2833_v10 = vpack.c.bf16 %v1051_v9, %v1050_v7 }
 0xe57   :  { %1946 = vmatpush3.bf16.msra.mxu0 %v952_v52 }
 0xe58   :  { %1947 = vmatprep.subr.bf16.mxu0 %v953_v39 }
 0xe5b   :  { %1948 = vmatpush3.bf16.msra.mxu0 %v953_v39 }
 0xe5c   :  { %1949 = vmatprep.subr.bf16.mxu0 %v954_v4 }
 0xe5f   :  { %1950 = vmatpush3.bf16.msra.mxu0 %v954_v4 }
 0xe60   :  { %1951 = vmatprep.subr.bf16.mxu0 %v955_v6 }
 0xe63   :  { %1952 = vmatpush3.bf16.msra.mxu0 %v955_v6 }
 0xf29   :  { %v810_v13 = vpop.f32.mrb[24].mxu0 }
 0xf2a   :  { %v817_v14 = vadd.f32 %v810_v13, %v235_v11  ;;  %v812_v15 = vpop.f32.mrb[25].mxu0 }
 0xf2b   :  { %v818_v16 = vadd.f32 %v812_v15, %v237_v12  ;;  %v814_v19 = vpop.f32.mrb[26].mxu0 }
 0xf2c   :  { %v815_v20 = vpop.f32.mrb[27].mxu0  ;;  %v1871_v22 = vmul.f32 -1.442695, %v817_v14 }
 0xf2d   :  { %2141 = vtanh.f32 %v818_v16  ;;  %v1872_v31 = vmul.f32 -1.442695, %v818_v16 }
 0xf2e   :  { %2143 = vpow2.f32 %v1871_v22  ;;  %v937_v22 = vld [vmem:[#allocation3 + $0x28] sm:$0xff] }
 0xf37   :  { %v2142_v21 = vpop.eup %2141 }
 0xf38   :  { %834 = vrot.lane.b32.xlu0 %v2142_v21, %s2412_s3  ;;  %v2144_v23 = vpop.eup %2143 }
 0xf39   :  { %v825_v24 = vadd.f32 1.0, %v2144_v23 }
 0xf3b   :  { %2145 = vrcp.f32 %v825_v24  ;;  %v935_v24 = vld [vmem:[#allocation3 + $0x18] sm:$0xff] }
 0xf45   :  { %v2146_v25 = vpop.eup %2145 }
 0xf46   :  { %v832_v1 = vmul.f32 %v2146_v25, %v761_v60  ;;  %v2413_v60 = vmov 0.0  }
 0xf47   :  { %1961 = vmatprep.subr.bf16.mxu1 %v2413_v60  ;;  %1977 = vmatprep.subr.bf16.mxu0 %v2413_v60 }
 0xfaa   :  { %v835_v63 = vpop.permute.xlu0 %834 }
 0xfab   :  { %v837_v26 = vmul.f32 %v2146_v25, %v835_v63  ;;  %v936_v63 = vld [vmem:[#allocation3 + $0x20] sm:$0xff] }
 0xfad   :  { %839 = vrot.lane.b32.xlu1 %v837_v26, %s2412_s3  ;;  %v950_v26 = vpack.c.bf16 %v937_v22, %v936_v63 }
0x101f   :  { %v840_v28 = vpop.permute.xlu1 %839 }
0x1020   :  { %v842_v29 = vadd.f32 %v840_v28, %v832_v1 }
0x1022   :  { %2147 = vtanh.f32 %v842_v29 }
0x1023   :  { %2149 = vpow2.f32 %v1872_v31 }
0x102c   :  { %v2148_v30 = vpop.eup %2147 }
0x102d   :  { %845 = vrot.lane.b32.xlu0 %v2148_v30, %s2412_s3  ;;  %v2150_v57 = vpop.eup %2149 }
0x102e   :  { %v826_v32 = vadd.f32 1.0, %v2150_v57 }
0x1030   :  { %2151 = vrcp.f32 %v826_v32 }
0x103a   :  { %v2152_v58 = vpop.eup %2151 }
0x109f   :  { %v846_v33 = vpop.permute.xlu0 %845 }
0x10a0   :  { %v848_v35 = vmul.f32 %v2152_v58, %v846_v33  ;;  %v1876_v58 = vld [vmem:[#allocation11] ss:$0 sm:$0xff] }
0x10a2   :  { %849 = vst.msk [vmem:[#allocation3 + $0x30] sm:$0xff] %vm157_vm0, %v848_v35  ;;  %v851_v37 = vpack.c.bf16 %v848_v35, %v848_v35 }
0x10a3   :  { %850 = vst.msk [vmem:[#allocation3 + $0x8] sm:$0xff] %vm363_vm1, %v848_v35 }
0x10a4   :  { %1873 = vmatmul.mubr.msk.bf16.vlgmr.msra.gmra.mrb[16].mxu1 %vm285_vm2, %v851_v37 }
0x10a5   :  { %1962 = vmatpush3.bf16.msra.mxu1 %v2830_v5  ;;  %1965 = vmatprep.mubr.msk.bf16.mxu1 %vm2414_vm3, %v2413_v60 }
0x10a6   :  { %1963 = vmatprep.subr.bf16.mxu1 %v2413_v60 }
0x10a9   :  { %1964 = vmatpush3.bf16.msra.mxu1 %v2833_v10  ;;  %v938_v28 = vld [vmem:[#allocation3 + $0x30] sm:$0xff] }
0x10aa   :  { %1969 = vmatprep.subr.bf16.mxu1 %v2413_v60  ;;  %v933_v21 = vld [vmem:[#allocation3 + $0x8] sm:$0xff] }
0x10ac   :  { %1966 = vmatmul.mubr.bf16.vlgmr.msra.gmra.mrb[20].mxu1 %v2411_v0  ;;  %v934_v0 = vld [vmem:[#allocation3 + $0x10] sm:$0xff] }
0x10ad   :  { %1970 = vmatpush3.bf16.msra.mxu1 %v2830_v5  ;;  %1973 = vmatprep.mubr.msk.bf16.mxu1 %vm2414_vm3, %v2413_v60  ;;  %v949_v25 = vpack.c.bf16 %v935_v24, %v934_v0 }
0x10ae   :  { %1971 = vmatprep.subr.bf16.mxu1 %v2413_v60 }
0x10b1   :  { %1972 = vmatpush3.bf16.msra.mxu1 %v2833_v10 }
0x10b2   :  { %1985 = vmatprep.subr.bf16.mxu1 %v2413_v60 }
0x1177   :  { %v891_v41 = vpop.f32.mrb[16].mxu1 }
0x1178   :  { %v898_v42 = vadd.f32 %v891_v41, %v239_v38  ;;  %v893_v43 = vpop.f32.mrb[17].mxu1 }
0x1179   :  { %v899_v44 = vadd.f32 %v893_v43, %v241_v40  ;;  %v895_v46 = vpop.f32.mrb[18].mxu1 }
0x117a   :  { %v896_v48 = vpop.f32.mrb[19].mxu1  ;;  %v1874_v49 = vmul.f32 -1.442695, %v898_v42 }
0x117b   :  { %2153 = vtanh.f32 %v899_v44  ;;  %v1875_v12 = vmul.f32 -1.442695, %v899_v44 }
0x117c   :  { %2155 = vpow2.f32 %v1874_v49 }
0x117f   :  { %v1091_v30 = vpop.f32.mrb[20].mxu1 }
0x1180   :  { %v1967_v31 = vpop.f32.mrb[21].mxu1 }
0x1181   :  { %v1094_v57 = vpop.f32.mrb[22].mxu1 }
0x1182   :  { %v1968_v32 = vpop.f32.mrb[23].mxu1 }
0x1185   :  { %v2154_v8 = vpop.eup %2153 }
0x1186   :  { %915 = vrot.lane.b32.xlu1 %v2154_v8, %s2412_s3  ;;  %v2156_v50 = vpop.eup %2155 }
0x1187   :  { %v906_v51 = vadd.f32 1.0, %v2156_v50 }
0x1189   :  { %2157 = vrcp.f32 %v906_v51 }
0x1193   :  { %v2158_v17 = vpop.eup %2157 }
0x1194   :  { %v913_v18 = vmul.f32 %v2158_v17, %v842_v29 }
0x11f8   :  { %v916_v45 = vpop.permute.xlu1 %915 }
0x11f9   :  { %v918_v2 = vmul.f32 %v2158_v17, %v916_v45 }
0x11fb   :  { %920 = vrot.lane.b32.xlu0 %v918_v2, %s2412_s3 }
0x126d   :  { %v921_v36 = vpop.permute.xlu0 %920 }
0x126e   :  { %v923_v53 = vadd.f32 %v921_v36, %v913_v18 }
0x1270   :  { %2159 = vtanh.f32 %v923_v53 }
0x1271   :  { %2161 = vpow2.f32 %v1875_v12 }
0x127a   :  { %v2160_v11 = vpop.eup %2159 }
0x127b   :  { %926 = vrot.lane.b32.xlu1 %v2160_v11, %s2412_s3  ;;  %v2162_v13 = vpop.eup %2161 }
0x127c   :  { %v907_v14 = vadd.f32 1.0, %v2162_v13 }
0x127e   :  { %2163 = vrcp.f32 %v907_v14 }
0x1288   :  { %v2164_v15 = vpop.eup %2163 }
0x12ed   :  { %v927_v16 = vpop.permute.xlu1 %926 }
0x12ee   :  { %v929_v19 = vmul.f32 %v2164_v15, %v927_v16 }
0x12f0   :  { %930 = vst.msk [vmem:[#allocation3 + $0x38] sm:$0xff] %vm157_vm0, %v929_v19 }
0x12f1   :  { %931 = vst.msk [vmem:[#allocation3] sm:$0xff] %vm363_vm1, %v929_v19 }
0x12f7   :  { %v2856_v1 = vld [vmem:[#allocation3 + $0x38] sm:$0xff] }
0x12f8   :  { %v932_v20 = vld [vmem:[#allocation3] sm:$0xff]  ;;  %v951_v29 = vpack.c.bf16 %v2856_v1, %v938_v28 }
0x12f9   :  { %v948_v23 = vpack.c.bf16 %v933_v21, %v932_v20 }
0x12fb   :  { %1953 = vmatprep.mubr.msk.bf16.mxu0 %vm285_vm2, %v948_v23 }
0x12fc   :  { %1954 = vmatmul.mubr.msk.bf16.vlgmr.msra.gmra.mrb[28].mxu0 %vm285_vm2, %v949_v25 }
0x12fd   :  { %1957 = vmatprep.mubr.msk.bf16.mxu0 %vm285_vm2, %v950_v26  ;;  %1978 = vmatpush3.bf16.msra.mxu0 %v2830_v5 }
0x12fe   :  { %1979 = vmatprep.subr.bf16.mxu0 %v2413_v60 }
0x1301   :  { %1980 = vmatpush3.bf16.msra.mxu0 %v2833_v10 }
0x1302   :  { %1993 = vmatprep.subr.bf16.mxu0 %v2413_v60 }
0x1304   :  { %1958 = vmatmul.mubr.msk.bf16.gmra.mrb[32].mxu0 %vm285_vm2, %v951_v29 }
0x1305   :  { %1981 = vmatprep.mubr.msk.bf16.mxu0 %vm2414_vm3, %v2413_v60 }
0x13cf   :  { %v1955_v33 = vpop.f32.mrb[28].mxu0 }
0x13d0   :  { %v2864_v35 = vadd.f32 %v1955_v33, %v1876_v58  ;;  %v1009_v37 = vpop.f32.mrb[29].mxu0 }
0x13d1   :  { %v1010_v38 = vadd.f32 %v1876_v58, %v1009_v37  ;;  %v1956_v40 = vpop.f32.mrb[30].mxu0 }
0x13d2   :  { %v2866_v41 = vadd.f32 %v1956_v40, %v1876_v58  ;;  %v1012_v42 = vpop.f32.mrb[31].mxu0 }
0x13d3   :  { %v1097_v43 = vadd.f32 %v1091_v30, %v1010_v38  ;;  %v1013_v44 = vadd.f32 %v1876_v58, %v1012_v42 }
0x13d5   :  { %2165 = vtanh.f32 %v1097_v43  ;;  %v1881_v47 = vmul.f32 -1.442695, %v1097_v43 }
0x13d7   :  { %v1959_v46 = vpop.f32.mrb[32].mxu0  ;;  %2167 = vpow2.f32 %v1881_v47 }
0x13d8   :  { %v2868_v48 = vadd.f32 %v1959_v46, %v1876_v58  ;;  %v1025_v8 = vpop.f32.mrb[33].mxu0 }
0x13d9   :  { %v2870_v49 = vadd.f32 %v1876_v58, %v1025_v8  ;;  %v1960_v50 = vpop.f32.mrb[34].mxu0 }
0x13da   :  { %v2872_v51 = vadd.f32 %v1960_v50, %v1876_v58  ;;  %v1028_v17 = vpop.f32.mrb[35].mxu0 }
0x13db   :  { %v2874_v45 = vadd.f32 %v1876_v58, %v1028_v17 }
0x13df   :  { %v2166_v2 = vpop.eup %2165 }
0x13e0   :  { %1107 = vrot.lane.b32.xlu0 %v2166_v2, %s2415_s0 }
0x13e1   :  { %v2168_v3 = vpop.eup %2167 }
0x13e2   :  { %v1101_v52 = vadd.f32 1.0, %v2168_v3 }
0x13e4   :  { %2169 = vrcp.f32 %v1101_v52 }
0x13ee   :  { %v2170_v18 = vpop.eup %2169 }
0x13ef   :  { %v1105_v36 = vmul.f32 0.0, %v2170_v18 }
0x1452   :  { %v1108_v27 = vpop.permute.xlu0 %1107 }
0x1453   :  { %v1110_v34 = vmul.f32 %v2170_v18, %v1108_v27 }
0x1455   :  { %1112 = vrot.lane.b32.xlu1 %v1110_v34, %s2415_s0 }
0x14c7   :  { %v1113_v39 = vpop.permute.xlu1 %1112 }
0x14c8   :  { %v1115_v53 = vadd.f32 %v1113_v39, %v1105_v36 }
0x14ca   :  { %2171 = vtanh.f32 %v1115_v53 }
0x14d4   :  { %v2172_v59 = vpop.eup %2171 }
0x14d5   :  { %1118 = vrot.lane.b32.xlu0 %v2172_v59, %s2415_s0 }
0x1547   :  { %v1119_v54 = vpop.permute.xlu0 %1118 }
0x1548   :  { %v1121_v61 = vmul.f32 %v2170_v18, %v1119_v54 }
0x154a   :  { %v1122_v4 = vpack.c.bf16 %v1121_v61, %v1121_v61 }
0x154c   :  { %1125 = vrot.lane.b32.xlu1 %v1122_v4, %s2412_s3 }
0x15be   :  { %v1126_v55 = vpop.permute.xlu1 %1125 }
0x15bf   :  { %1974 = vmatmul.mubr.msk.bf16.vlgmr.msra.gmra.mrb[24].mxu1 %vm157_vm0, %v1126_v55 }
0x15c0   :  { %1986 = vmatpush3.bf16.msra.mxu1 %v2830_v5  ;;  %1989 = vmatprep.mubr.msk.bf16.mxu1 %vm2414_vm3, %v2413_v60 }
0x15c1   :  { %1987 = vmatprep.subr.bf16.mxu1 %v2413_v60 }
0x15c4   :  { %1988 = vmatpush3.bf16.msra.mxu1 %v2833_v10 }
0x15c5   :  { %2001 = vmatprep.subr.bf16.mxu1 %v2413_v60 }
0x1692   :  { %v1164_v62 = vpop.f32.mrb[24].mxu1 }
0x1693   :  { %v1170_v56 = vadd.f32 %v1164_v62, %v1013_v44  ;;  %v1975_v6 = vpop.f32.mrb[25].mxu1 }
0x1694   :  { %v1167_v7 = vpop.f32.mrb[26].mxu1 }
0x1695   :  { %2173 = vtanh.f32 %v1170_v56  ;;  %v1976_v9 = vpop.f32.mrb[27].mxu1  ;;  %v1883_v12 = vmul.f32 -1.442695, %v1170_v56 }
0x1697   :  { %2175 = vpow2.f32 %v1883_v12 }
0x169f   :  { %v2174_v11 = vpop.eup %2173 }
0x16a0   :  { %1180 = vrot.lane.b32.xlu0 %v2174_v11, %s2415_s0 }
0x16a1   :  { %v2176_v13 = vpop.eup %2175 }
0x16a2   :  { %v1174_v14 = vadd.f32 1.0, %v2176_v13 }
0x16a4   :  { %2177 = vrcp.f32 %v1174_v14 }
0x16ae   :  { %v2178_v15 = vpop.eup %2177 }
0x16af   :  { %v1178_v0 = vmul.f32 %v2178_v15, %v1115_v53 }
0x1712   :  { %v1181_v16 = vpop.permute.xlu0 %1180 }
0x1713   :  { %v1183_v19 = vmul.f32 %v2178_v15, %v1181_v16 }
0x1715   :  { %1185 = vrot.lane.b32.xlu1 %v1183_v19, %s2415_s0 }
0x1787   :  { %v1186_v20 = vpop.permute.xlu1 %1185 }
0x1788   :  { %v1188_v21 = vadd.f32 %v1186_v20, %v1178_v0 }
0x178a   :  { %2179 = vtanh.f32 %v1188_v21 }
0x1794   :  { %v2180_v22 = vpop.eup %2179 }
0x1795   :  { %1191 = vrot.lane.b32.xlu0 %v2180_v22, %s2415_s0 }
0x1807   :  { %v1192_v23 = vpop.permute.xlu0 %1191 }
0x1808   :  { %v1194_v24 = vmul.f32 %v2178_v15, %v1192_v23 }
0x180a   :  { %v1195_v25 = vpack.c.bf16 %v1194_v24, %v1194_v24 }
0x180c   :  { %1198 = vrot.lane.b32.xlu1 %v1195_v25, %s2412_s3 }
0x187e   :  { %v1199_v63 = vpop.permute.xlu1 %1198 }
0x187f   :  { %1982 = vmatmul.mubr.msk.bf16.vlgmr.msra.gmra.mrb[36].mxu0 %vm157_vm0, %v1199_v63 }
0x1880   :  { %1994 = vmatpush3.bf16.msra.mxu0 %v2830_v5  ;;  %1997 = vmatprep.mubr.msk.bf16.mxu0 %vm2414_vm3, %v2413_v60 }
0x1881   :  { %1995 = vmatprep.subr.bf16.mxu0 %v2413_v60 }
0x1884   :  { %1996 = vmatpush3.bf16.msra.mxu0 %v2833_v10 }
0x1885   :  { %2009 = vmatprep.subr.bf16.mxu0 %v2413_v60 }
0x1952   :  { %v1237_v26 = vpop.f32.mrb[36].mxu0 }
0x1953   :  { %v1243_v28 = vadd.f32 %v1237_v26, %v2864_v35  ;;  %v1983_v29 = vpop.f32.mrb[37].mxu0 }
0x1954   :  { %v1240_v30 = vpop.f32.mrb[38].mxu0 }
0x1955   :  { %2181 = vtanh.f32 %v1243_v28  ;;  %v1984_v31 = vpop.f32.mrb[39].mxu0  ;;  %v1885_v32 = vmul.f32 -1.442695, %v1243_v28 }
0x1957   :  { %2183 = vpow2.f32 %v1885_v32 }
0x195f   :  { %v2182_v57 = vpop.eup %2181 }
0x1960   :  { %1253 = vrot.lane.b32.xlu0 %v2182_v57, %s2415_s0 }
0x1961   :  { %v2184_v58 = vpop.eup %2183 }
0x1962   :  { %v1247_v33 = vadd.f32 1.0, %v2184_v58 }
0x1964   :  { %2185 = vrcp.f32 %v1247_v33 }
0x196e   :  { %v2186_v37 = vpop.eup %2185 }
0x196f   :  { %v1251_v42 = vmul.f32 %v2186_v37, %v1188_v21 }
0x19d2   :  { %v1254_v38 = vpop.permute.xlu0 %1253 }
0x19d3   :  { %v1256_v40 = vmul.f32 %v2186_v37, %v1254_v38 }
0x19d5   :  { %1258 = vrot.lane.b32.xlu1 %v1256_v40, %s2415_s0 }
0x1a47   :  { %v1259_v43 = vpop.permute.xlu1 %1258 }
0x1a48   :  { %v1261_v35 = vadd.f32 %v1259_v43, %v1251_v42 }
0x1a4a   :  { %2187 = vtanh.f32 %v1261_v35 }
0x1a54   :  { %v2188_v44 = vpop.eup %2187 }
0x1a55   :  { %1264 = vrot.lane.b32.xlu0 %v2188_v44, %s2415_s0 }
0x1ac7   :  { %v1265_v46 = vpop.permute.xlu0 %1264 }
0x1ac8   :  { %v1267_v8 = vmul.f32 %v2186_v37, %v1265_v46 }
0x1aca   :  { %v1268_v50 = vpack.c.bf16 %v1267_v8, %v1267_v8 }
0x1acc   :  { %1271 = vrot.lane.b32.xlu1 %v1268_v50, %s2412_s3 }
0x1b3e   :  { %v1272_v17 = vpop.permute.xlu1 %1271 }
0x1b3f   :  { %1990 = vmatmul.mubr.msk.bf16.vlgmr.msra.gmra.mrb[28].mxu1 %vm157_vm0, %v1272_v17  ;;  %v1635_v17 = vld [vmem:[%s3041_s7] sm:$0xff] }
0x1b40   :  { %2002 = vmatpush3.bf16.msra.mxu1 %v2830_v5  ;;  %2005 = vmatprep.mubr.msk.bf16.mxu1 %vm2414_vm3, %v2413_v60 }
0x1b41   :  { %2003 = vmatprep.subr.bf16.mxu1 %v2413_v60 }
0x1b44   :  { %2004 = vmatpush3.bf16.msra.mxu1 %v2833_v10 }
0x1b45   :  { %2017 = vmatprep.subr.bf16.mxu1 %v2413_v60 }
0x1c12   :  { %v1310_v2 = vpop.f32.mrb[28].mxu1 }
0x1c13   :  { %v1316_v47 = vadd.f32 %v1310_v2, %v2866_v41  ;;  %v1991_v3 = vpop.f32.mrb[29].mxu1  ;;  %v1636_v2 = vld [vmem:[%s3041_s7 + $0x8] sm:$0xff] }
0x1c14   :  { %v1313_v52 = vpop.f32.mrb[30].mxu1  ;;  %v1637_v3 = vld [vmem:[%s3041_s7 + $0x10] sm:$0xff] }
0x1c15   :  { %2189 = vtanh.f32 %v1316_v47  ;;  %v1992_v18 = vpop.f32.mrb[31].mxu1  ;;  %v1887_v34 = vmul.f32 -1.442695, %v1316_v47  ;;  %v1644_v47 = vpack.c.bf16 %v1636_v2, %v1635_v17  ;;  %v1638_v52 = vld [vmem:[%s3041_s7 + $0x18] sm:$0xff] }
0x1c17   :  { %2191 = vpow2.f32 %v1887_v34  ;;  %v1639_v34 = vld [vmem:[%s3041_s7 + $0x20] sm:$0xff] }
0x1c1f   :  { %v2190_v27 = vpop.eup %2189 }
0x1c20   :  { %1326 = vrot.lane.b32.xlu0 %v2190_v27, %s2415_s0  ;;  %v1645_v27 = vpack.c.bf16 %v1638_v52, %v1637_v3 }
0x1c21   :  { %v2192_v36 = vpop.eup %2191 }
0x1c22   :  { %v1320_v39 = vadd.f32 1.0, %v2192_v36  ;;  %v1640_v36 = vld [vmem:[%s3041_s7 + $0x28] sm:$0xff] }
0x1c24   :  { %2193 = vrcp.f32 %v1320_v39  ;;  %v1646_v39 = vpack.c.bf16 %v1640_v36, %v1639_v34 }
0x1c2e   :  { %v2194_v53 = vpop.eup %2193 }
0x1c2f   :  { %v1324_v61 = vmul.f32 %v2194_v53, %v1261_v35 }
0x1c92   :  { %v1327_v59 = vpop.permute.xlu0 %1326 }
0x1c93   :  { %v1329_v54 = vmul.f32 %v2194_v53, %v1327_v59  ;;  %v1642_v59 = vld [vmem:[%s3041_s7 + $0x38] sm:$0xff] }
0x1c95   :  { %1331 = vrot.lane.b32.xlu1 %v1329_v54, %s2415_s0 }
0x1d07   :  { %v1332_v4 = vpop.permute.xlu1 %1331 }
0x1d08   :  { %v1334_v41 = vadd.f32 %v1332_v4, %v1324_v61  ;;  %v1643_v61 = vpack.c.bf16 %v2856_v1, %v2856_v1 }
0x1d0a   :  { %2195 = vtanh.f32 %v1334_v41 }
0x1d14   :  { %v2196_v55 = vpop.eup %2195 }
0x1d15   :  { %1337 = vrot.lane.b32.xlu0 %v2196_v55, %s2415_s0 }
0x1d87   :  { %v1338_v62 = vpop.permute.xlu0 %1337 }
0x1d88   :  { %v1340_v56 = vmul.f32 %v2194_v53, %v1338_v62  ;;  %v1641_v53 = vld [vmem:[%s3041_s7 + $0x30] sm:$0xff] }
0x1d89   :  { %v1647_v54 = vpack.c.bf16 %v1642_v59, %v1641_v53  ;;  %v1717_v53 = vld [vmem:[%s3044_s10] sm:$0xff]  ;;  %v1718_v59 = vld [vmem:[%s3044_s10 + $0x8] sm:$0xff] }
0x1d8a   :  { %v1341_v6 = vpack.c.bf16 %v1340_v56, %v1340_v56 }
0x1d8c   :  { %1344 = vrot.lane.b32.xlu1 %v1341_v6, %s2412_s3 }
0x1dfe   :  { %v1345_v7 = vpop.permute.xlu1 %1344 }
0x1dff   :  { %1998 = vmatmul.mubr.msk.bf16.vlgmr.msra.gmra.mrb[40].mxu0 %vm157_vm0, %v1345_v7 }
0x1e00   :  { %2010 = vmatpush3.bf16.msra.mxu0 %v2830_v5  ;;  %2013 = vmatprep.mubr.msk.bf16.mxu0 %vm2414_vm3, %v2413_v60 }
0x1e01   :  { %2011 = vmatprep.subr.bf16.mxu0 %v2413_v60 }
0x1e04   :  { %2012 = vmatpush3.bf16.msra.mxu0 %v2833_v10 }
0x1e05   :  { %2025 = vmatprep.subr.bf16.mxu0 %v2413_v60 }
0x1ed2   :  { %v1383_v9 = vpop.f32.mrb[40].mxu0 }
0x1ed3   :  { %v1389_v11 = vadd.f32 %v1383_v9, %v2870_v49  ;;  %v1999_v12 = vpop.f32.mrb[41].mxu0 }
0x1ed4   :  { %v1386_v13 = vpop.f32.mrb[42].mxu0 }
0x1ed5   :  { %2197 = vtanh.f32 %v1389_v11  ;;  %v2000_v14 = vpop.f32.mrb[43].mxu0  ;;  %v1889_v16 = vmul.f32 -1.442695, %v1389_v11 }
0x1ed7   :  { %2199 = vpow2.f32 %v1889_v16 }
0x1edf   :  { %v2198_v15 = vpop.eup %2197 }
0x1ee0   :  { %1399 = vrot.lane.b32.xlu0 %v2198_v15, %s2415_s0 }
0x1ee1   :  { %v2200_v19 = vpop.eup %2199 }
0x1ee2   :  { %v1393_v0 = vadd.f32 1.0, %v2200_v19 }
0x1ee4   :  { %2201 = vrcp.f32 %v1393_v0 }
0x1eee   :  { %v2202_v20 = vpop.eup %2201 }
0x1eef   :  { %v1397_v23 = vmul.f32 %v2202_v20, %v1334_v41 }
0x1f52   :  { %v1400_v21 = vpop.permute.xlu0 %1399 }
0x1f53   :  { %v1402_v22 = vmul.f32 %v2202_v20, %v1400_v21 }
0x1f55   :  { %1404 = vrot.lane.b32.xlu1 %v1402_v22, %s2415_s0  ;;  %v1896_v22 = vld [vmem:[#allocation14] ss:$0 sm:$0xff] }
0x1fc7   :  { %v1405_v24 = vpop.permute.xlu1 %1404 }
0x1fc8   :  { %v1407_v49 = vadd.f32 %v1405_v24, %v1397_v23 }
0x1fca   :  { %2203 = vtanh.f32 %v1407_v49 }
0x1fd4   :  { %v2204_v25 = vpop.eup %2203 }
0x1fd5   :  { %1410 = vrot.lane.b32.xlu0 %v2204_v25, %s2415_s0 }
0x2047   :  { %v1411_v63 = vpop.permute.xlu0 %1410 }
0x2048   :  { %v1413_v26 = vmul.f32 %v2202_v20, %v1411_v63 }
0x204a   :  { %v1414_v28 = vpack.c.bf16 %v1413_v26, %v1413_v26 }
0x204c   :  { %1417 = vrot.lane.b32.xlu1 %v1414_v28, %s2412_s3 }
0x20be   :  { %v1418_v29 = vpop.permute.xlu1 %1417 }
0x20bf   :  { %2006 = vmatmul.mubr.msk.bf16.vlgmr.msra.gmra.mrb[32].mxu1 %vm157_vm0, %v1418_v29 }
0x20c0   :  { %2018 = vmatpush3.bf16.msra.mxu1 %v2830_v5  ;;  %2021 = vmatprep.mubr.msk.bf16.mxu1 %vm2414_vm3, %v2413_v60 }
0x20c1   :  { %2019 = vmatprep.subr.bf16.mxu1 %v2413_v60 }
0x20c4   :  { %2020 = vmatpush3.bf16.msra.mxu1 %v2833_v10 }
0x20c5   :  { %2037 = vmatprep.subr.bf16.mxu1 %v2413_v60 }
0x2192   :  { %v1456_v30 = vpop.f32.mrb[32].mxu1 }
0x2193   :  { %v1462_v31 = vadd.f32 %v1456_v30, %v2874_v45  ;;  %v2007_v57 = vpop.f32.mrb[33].mxu1 }
0x2194   :  { %v1459_v32 = vpop.f32.mrb[34].mxu1 }
0x2195   :  { %2205 = vtanh.f32 %v1462_v31  ;;  %v2008_v58 = vpop.f32.mrb[35].mxu1  ;;  %v1891_v5 = vmul.f32 -1.442695, %v1462_v31 }
0x2197   :  { %2207 = vpow2.f32 %v1891_v5  ;;  %v1724_v5 = vld [vmem:[%s3044_s10 + $0x28] sm:$0xff] }
0x219f   :  { %v2206_v33 = vpop.eup %2205 }
0x21a0   :  { %1472 = vrot.lane.b32.xlu0 %v2206_v33, %s2415_s0  ;;  %v1723_v33 = vld [vmem:[%s3044_s10 + $0x20] sm:$0xff] }
0x21a1   :  { %v2208_v37 = vpop.eup %2207 }
0x21a2   :  { %v1466_v38 = vadd.f32 1.0, %v2208_v37  ;;  %v1725_v37 = vld [vmem:[%s3044_s10 + $0x30] sm:$0xff] }
0x21a4   :  { %2209 = vrcp.f32 %v1466_v38  ;;  %v1727_v38 = vpack.c.bf16 %v1724_v5, %v1723_v33 }
0x21ae   :  { %v2210_v40 = vpop.eup %2209 }
0x21af   :  { %v1470_v43 = vmul.f32 %v2210_v40, %v1407_v49 }
0x2212   :  { %v1473_v42 = vpop.permute.xlu0 %1472 }
0x2213   :  { %v1475_v10 = vmul.f32 %v2210_v40, %v1473_v42 }
0x2215   :  { %1477 = vrot.lane.b32.xlu1 %v1475_v10, %s2415_s0 }
0x2287   :  { %v1478_v35 = vpop.permute.xlu1 %1477 }
0x2288   :  { %v1480_v45 = vadd.f32 %v1478_v35, %v1470_v43 }
0x228a   :  { %2211 = vtanh.f32 %v1480_v45 }
0x2294   :  { %v2212_v44 = vpop.eup %2211 }
0x2295   :  { %1483 = vrot.lane.b32.xlu0 %v2212_v44, %s2415_s0 }
0x2307   :  { %v1484_v46 = vpop.permute.xlu0 %1483 }
0x2308   :  { %v1486_v8 = vmul.f32 %v2210_v40, %v1484_v46  ;;  %v1726_v40 = vld [vmem:[%s3044_s10 + $0x38] sm:$0xff] }
0x2309   :  { %v1728_v42 = vpack.c.bf16 %v1726_v40, %v1725_v37 }
0x230a   :  { %v1487_v50 = vpack.c.bf16 %v1486_v8, %v1486_v8 }
0x230c   :  { %1490 = vrot.lane.b32.xlu1 %v1487_v50, %s2412_s3 }
0x237e   :  { %v1491_v18 = vpop.permute.xlu1 %1490 }
0x237f   :  { %2014 = vmatmul.mubr.msk.bf16.vlgmr.msra.gmra.mrb[44].mxu0 %vm157_vm0, %v1491_v18 }
0x2380   :  { %2026 = vmatpush3.bf16.msra.mxu0 %v1644_v47  ;;  %2033 = vmatprep.mubr.msk.bf16.mxu0 %vm2414_vm3, %v2413_v60 }
0x2381   :  { %2027 = vmatprep.subr.bf16.mxu0 %v2413_v60 }
0x2384   :  { %2028 = vmatpush3.bf16.msra.mxu0 %v1645_v27 }
0x2385   :  { %2029 = vmatprep.subr.bf16.mxu0 %v2413_v60 }
0x2388   :  { %2030 = vmatpush3.bf16.msra.mxu0 %v1646_v39 }
0x2389   :  { %2031 = vmatprep.subr.bf16.mxu0 %v2413_v60 }
0x238c   :  { %2032 = vmatpush3.bf16.msra.mxu0 %v1647_v54  ;;  %v1719_v54 = vld [vmem:[%s3044_s10 + $0x10] sm:$0xff] }
0x238f   :  { %2034 = vmatmul.mubr.msk.bf16.vlgmr.msra.gmra.mrb[48].mxu0 %vm285_vm2, %v1643_v61 }
0x2452   :  { %v1529_v4 = vpop.f32.mrb[44].mxu0 }
0x2453   :  { %v1535_v41 = vadd.f32 %v1529_v4, %v2868_v48  ;;  %v2015_v55 = vpop.f32.mrb[45].mxu0  ;;  %v1721_v4 = vpack.c.bf16 %v1718_v59, %v1717_v53 }
0x2454   :  { %v1532_v62 = vpop.f32.mrb[46].mxu0 }
0x2455   :  { %2213 = vtanh.f32 %v1535_v41  ;;  %v2016_v56 = vpop.f32.mrb[47].mxu0  ;;  %v1893_v13 = vmul.f32 -1.442695, %v1535_v41  ;;  %v1720_v41 = vld [vmem:[%s3044_s10 + $0x18] sm:$0xff] }
0x2456   :  { %v1722_v56 = vpack.c.bf16 %v1720_v41, %v1719_v54 }
0x2457   :  { %2215 = vpow2.f32 %v1893_v13 }
0x245f   :  { %v2214_v6 = vpop.eup %2213 }
0x2460   :  { %1545 = vrot.lane.b32.xlu0 %v2214_v6, %s2415_s0 }
0x2461   :  { %v2216_v14 = vpop.eup %2215 }
0x2462   :  { %v1692_v7 = vpop.f32.mrb[48].mxu0  ;;  %v1539_v1 = vadd.f32 1.0, %v2216_v14 }
0x2463   :  { %v2035_v9 = vpop.f32.mrb[49].mxu0  ;;  %v1693_v23 = vadd.f32 %v1896_v22, %v1692_v7 }
0x2464   :  { %v1695_v11 = vpop.f32.mrb[50].mxu0  ;;  %2217 = vrcp.f32 %v1539_v1  ;;  %v1901_v1 = vld [vmem:[%s3045_s11] ss:$0 sm:$0xff] }
0x2465   :  { %v2036_v12 = vpop.f32.mrb[51].mxu0  ;;  %v1898_v26 = vmul.f32 -1.442695, %v1693_v23 }
0x246e   :  { %v2218_v15 = vpop.eup %2217 }
0x246f   :  { %v1543_v48 = vmul.f32 %v2218_v15, %v1480_v45 }
0x24d2   :  { %v1546_v16 = vpop.permute.xlu0 %1545 }
0x24d3   :  { %v1548_v19 = vmul.f32 %v2218_v15, %v1546_v16 }
0x24d5   :  { %1550 = vrot.lane.b32.xlu1 %v1548_v19, %s2415_s0 }
0x2547   :  { %v1551_v0 = vpop.permute.xlu1 %1550 }
0x2548   :  { %v1553_v20 = vadd.f32 %v1551_v0, %v1543_v48 }
0x254a   :  { %2219 = vtanh.f32 %v1553_v20 }
0x254b   :  { %2221 = vtanh.f32 %v1693_v23 }
0x254c   :  { %2223 = vpow2.f32 %v1898_v26 }
0x2554   :  { %v2220_v21 = vpop.eup %2219 }
0x2555   :  { %1556 = vrot.lane.b32.xlu0 %v2220_v21, %s2415_s0  ;;  %v2222_v63 = vpop.eup %2221 }
0x2556   :  { %v2224_v28 = vpop.eup %2223 }
0x2557   :  { %v1701_v29 = vadd.f32 1.0, %v2224_v28 }
0x2559   :  { %2225 = vrcp.f32 %v1701_v29 }
0x2563   :  { %v2226_v31 = vpop.eup %2225 }
0x25c7   :  { %v1557_v24 = vpop.permute.xlu0 %1556 }
0x25c8   :  { %v1559_v49 = vmul.f32 %v2218_v15, %v1557_v24 }
0x25ca   :  { %v1560_v25 = vpack.c.bf16 %v1559_v49, %v1559_v49 }
0x25cc   :  { %1563 = vrot.lane.b32.xlu1 %v1560_v25, %s2412_s3 }
0x25d0   :  { %1706 = vrot.lane.b32.xlu1 %v2222_v63, %s2415_s0 }
0x263e   :  { %v1564_v30 = vpop.permute.xlu1 %1563 }
0x263f   :  { %2022 = vmatmul.mubr.msk.bf16.vlgmr.msra.gmra.mrb[36].mxu1 %vm157_vm0, %v1564_v30 }
0x2640   :  { %2041 = vmatprep.mubr.msk.bf16.mxu1 %vm2414_vm3, %v2413_v60  ;;  %2038 = vmatpush3.bf16.msra.mxu1 %v1727_v38 }
0x2641   :  { %2039 = vmatprep.subr.bf16.mxu1 %v2413_v60 }
0x2642   :  { %v1707_v57 = vpop.permute.xlu1 %1706 }
0x2643   :  { %v1709_v32 = vmul.f32 %v2226_v31, %v1707_v57 }
0x2644   :  { %2040 = vmatpush3.bf16.msra.mxu1 %v1728_v42 }
0x2645   :  { %2227 = vtanh.f32 %v1709_v32  ;;  %2045 = vmatprep.subr.bf16.mxu1 %v2413_v60 }
0x264f   :  { %v2228_v58 = vpop.eup %2227 }
0x2650   :  { %1712 = vrot.lane.b32.xlu1 %v2228_v58, %s2412_s3 }
0x26c2   :  { %v1713_v10 = vpop.permute.xlu1 %1712 }
0x26c3   :  { %v1715_v43 = vmul.f32 %v2226_v31, %v1713_v10 }
0x26c5   :  { %v1716_v35 = vpack.c.bf16 %v1715_v43, %v1715_v43 }
0x26c7   :  { %1730 = vrot.lane.b32.xlu1 %v1716_v35, %s2412_s3 }
0x2712   :  { %v1602_v45 = vpop.f32.mrb[36].mxu1 }
0x2713   :  { %v1608_v44 = vadd.f32 %v1602_v45, %v2872_v51  ;;  %v2023_v46 = vpop.f32.mrb[37].mxu1 }
0x2714   :  { %v1605_v8 = vpop.f32.mrb[38].mxu1 }
0x2715   :  { %2229 = vtanh.f32 %v1608_v44  ;;  %v2024_v50 = vpop.f32.mrb[39].mxu1  ;;  %v1895_v47 = vmul.f32 -1.442695, %v1608_v44 }
0x2717   :  { %2231 = vpow2.f32 %v1895_v47 }
0x271f   :  { %v2230_v17 = vpop.eup %2229 }
0x2720   :  { %1618 = vrot.lane.b32.xlu0 %v2230_v17, %s2415_s0 }
0x2721   :  { %v2232_v3 = vpop.eup %2231 }
0x2722   :  { %v1612_v52 = vadd.f32 1.0, %v2232_v3 }
0x2724   :  { %2233 = vrcp.f32 %v1612_v52 }
0x272e   :  { %v2234_v18 = vpop.eup %2233 }
0x272f   :  { %v1616_v34 = vmul.f32 %v2234_v18, %v1553_v20 }
0x2739   :  { %v1731_v2 = vpop.permute.xlu1 %1730 }
0x273a   :  { %2042 = vmatmul.mubr.msk.bf16.vlgmr.msra.gmra.mrb[40].mxu1 %vm157_vm0, %v1731_v2 }
0x273b   :  { %2049 = vmatprep.mubr.msk.bf16.mxu1 %vm2414_vm3, %v2413_v60  ;;  %2046 = vmatpush3.bf16.msra.mxu1 %v1721_v4 }
0x273c   :  { %2047 = vmatprep.subr.bf16.mxu1 %v2413_v60 }
0x273f   :  { %2048 = vmatpush3.bf16.msra.mxu1 %v1722_v56 }
0x2792   :  { %v1619_v51 = vpop.permute.xlu0 %1618 }
0x2793   :  { %v1621_v27 = vmul.f32 %v2234_v18, %v1619_v51 }
0x2795   :  { %1623 = vrot.lane.b32.xlu0 %v1621_v27, %s2415_s0 }
0x2807   :  { %v1624_v36 = vpop.permute.xlu0 %1623 }
0x2808   :  { %v1626_v39 = vadd.f32 %v1624_v36, %v1616_v34 }
0x280a   :  { %2235 = vtanh.f32 %v1626_v39 }
0x280d   :  { %v1769_v61 = vpop.f32.mrb[40].mxu1 }
0x280e   :  { %v2043_v55 = vpop.f32.mrb[41].mxu1 }
0x280f   :  { %v1772_v62 = vpop.f32.mrb[42].mxu1 }
0x2810   :  { %v2044_v6 = vpop.f32.mrb[43].mxu1 }
0x2814   :  { %v2236_v7 = vpop.eup %2235 }
0x2815   :  { %1629 = vrot.lane.b32.xlu0 %v2236_v7, %s2415_s0  ;;  %s2369_s0 = scalar_lea.vmem %s1838_s5, 128 }
0x2816   :  { %p2370_p6 = scmp.ne.s32.totalorder %s1838_s5, %s2369_s0  ;;  %p2375_p8 = scmp.lt.s32.totalorder %s2369_s0, %s2369_s0 }
0x2818   :  { %p2376_p9 = por %p2375_p8, %p2374_p7 }
0x281a   :  { %p2377_p10 = pnand %p2376_p9, %p2370_p6 }
0x2887   :  { %v1630_v9 = vpop.permute.xlu0 %1629 }
0x2888   :  { %v1632_v11 = vmul.f32 %v2234_v18, %v1630_v9 }
0x288a   :  { %v1633_v12 = vpack.c.bf16 %v1632_v11, %v1632_v11 }
0x288c   :  { %1776 = vrot.lane.b32.xlu0 %v1633_v12, %s2412_s3 }
0x28fe   :  { %v1777_v13 = vpop.permute.xlu0 %1776 }
0x28ff   :  { %2050 = vmatmul.mubr.msk.bf16.vlgmr.msra.gmra.mrb[44].mxu1 %vm157_vm0, %v1777_v13 }
0x29d2   :  { %v1815_v14 = vpop.f32.mrb[44].mxu1 }
0x29d3   :  { %v1816_v60 = vadd.f32 %v1815_v14, %v1769_v61  ;;  %v2051_v15 = vpop.f32.mrb[45].mxu1 }
0x29d4   :  { %v1818_v16 = vpop.f32.mrb[46].mxu1 }
0x29d5   :  { %v1828_v19 = vadd.f32 %v1901_v1, %v1816_v60  ;;  %v2052_v48 = vpop.f32.mrb[47].mxu1 }
0x29d7   :  { %1830 = vst.msk [vmem:[#allocation16] sm:$0xff] %vm1829_vm4, %v1828_v19 }
0x29d8   :  { %2380 = shalt.err (!%p2377_p10)
}
0x29d9   :  { %s2381_s11 = scalar_lea.hbm %s3046_s12, 128 }
0x29da   :  { %p2382_p11 = scmp.ne.s32.totalorder %s3046_s12, %s2381_s11  ;;  %p2385_p12 = scmp.lt.u32.totalorder %s2381_s11, %s3046_s12 }
0x29dc   :  { %p2387_p13 = pnand %p2385_p12, %p2382_p11 }
0x29de   :  { %2390 = shalt.err (!%p2387_p13)
}
0x29df   :  { %1840 = dma.vmem_to_hbm [thread:$0]  %s1838_s5, 128, %s3046_s12, [#allocation7]  }
0x29e0   :  { %2399 = dma.done.wait [#allocation7], 128  }
0x29e1   :  { %2400 = vsyncadd [#allocation7], 4294967168 }
0x29e2   :  { %1844 = vsyncpa [#allocation6], 1 }
0x29e3   :  { %1845 = vsyncpa [#allocation9], 1 }
0x29e4   :  { %1846 = vsyncpa [#allocation12], 1 }
0x29e5   :  { %1847 = vsyncpa [#allocation15], 1 }
0x29e6   :  { %1848 = vsyncpa [#allocation7], 1 }

</bundles_post_ra>
